<compile_context>
chip_gen: v7x
topology: tpu7x:2x2x1
jax: 0.10.0
libtpu: 0.0.40
codegen_flags: <defaults>
</compile_context>

<pallas_src>
import functools

import jax
import jax.numpy as jnp
from jax.experimental import pallas as pl
from jax.experimental.pallas import tpu as pltpu


# ----------------------------------------------------------------------------
# Kernel
# ----------------------------------------------------------------------------
def _fused_mlp_kernel(x_ref, b_ref, *refs, num_layers: int):
    """refs = (w0, w1, ..., w_{L-1}, o_ref); b_ref is the stacked (L, n_max) bias."""
    o_ref = refs[-1]
    w_refs = refs[:num_layers]

    h = x_ref[...].astype(jnp.float32)
    for layer in range(num_layers):
        w = w_refs[layer][...]                       # VMEM-resident, lane-padded
        n = w.shape[1]
        # MXU matmul: operand dtype follows the weight storage dtype
        # (f32 or bf16), accumulation always f32.
        acc = jnp.dot(h.astype(w.dtype), w, preferred_element_type=jnp.float32)
        h = acc + b_ref[layer, :n]                   # f32 bias add (VPU)
        if layer != num_layers - 1:
            h = jnp.tanh(h)                          # f32 tanh (EUP; v5e-safe)
        # Dropout(p) in eval mode is the identity -> nothing to do.
    o_ref[...] = h.astype(o_ref.dtype)


# ----------------------------------------------------------------------------
# Wrapper
# ----------------------------------------------------------------------------
def _round_up(v, mult):
    return ((v + mult - 1) // mult) * mult


def _vmem_capacity_bytes():
    try:
        return int(pltpu.get_tpu_info().vmem_capacity_bytes)
    except Exception:
        return 64 << 20          # conservative default (v7x per-TC)


def _num_parallel_cores():
    # Only v7x has 2 TensorCores/chip reachable through "parallel" grid steps;
    # on v5e/v6e extra grid steps are pure per-step overhead.
    try:
        kind = jax.devices()[0].device_kind.lower()
    except Exception:
        return 1
    return 2 if "v7" in kind else 1


def mlp_forward(x, params, *, tile_m=1024, matmul_dtype=None):
    """Fused forward pass: (Linear -> Tanh -> Dropout[eval])* -> Linear.

    x:            (batch, input_size)
    params:       list of (w, b); w shaped (in_features, out_features)
                  (PyTorch Linear weight transposed), b shaped (out_features,).
    matmul_dtype: optional weight-storage / MXU-operand dtype (e.g. jnp.bfloat16
                  on v6e/v7x).  Accumulation, bias add and tanh stay float32.
    """
    m, k = x.shape
    num_layers = len(params)
    n_out = params[-1][1].shape[0]
    w_dtype = jnp.dtype(matmul_dtype) if matmul_dtype is not None else jnp.dtype(x.dtype)

    # --- zero-pad EVERY layer width to a multiple of 128 lanes ---------------
    # Padded weight columns / bias entries are 0, so padded activations are
    # exactly tanh(0) = 0, and padded rows of the next layer are 0 -> padding
    # never affects real outputs; the final padded columns are sliced off.
    padded_ws, padded_bs = [], []
    prev_dim = k
    for (w, b) in params:
        k_in, n_feat = w.shape
        n_pad = max(128, _round_up(n_feat, 128))
        w_p = jnp.pad(w, ((0, prev_dim - k_in), (0, n_pad - n_feat)))
        b_p = jnp.pad(b, (0, n_pad - n_feat))
        padded_ws.append(w_p.astype(w_dtype))
        padded_bs.append(b_p.astype(jnp.float32))
        prev_dim = n_pad
    n_last_pad = prev_dim
    n_max = max(w.shape[1] for w in padded_ws)
    bias_stack = jnp.stack(
        [jnp.pad(b, (0, n_max - b.shape[0])) for b in padded_bs], axis=0)   # (L, n_max) f32

    # --- VMEM budget -> batch tile size --------------------------------------
    x_itemsize = jnp.dtype(x.dtype).itemsize
    out_itemsize = x_itemsize
    w_bytes = (sum(int(w.size) * w.dtype.itemsize for w in padded_ws)
               + int(bias_stack.size) * 4)                     # single-buffered residents
    per_row_bytes = (2 * k * x_itemsize                        # double-buffered input tile
                     + 2 * n_last_pad * out_itemsize           # double-buffered output tile
                     + 2 * n_max * 4)                          # live f32 intermediates
    vmem_cap = _vmem_capacity_bytes()
    budget = int(0.6 * vmem_cap)
    # TODO(synk): if resident weights alone exceed the budget (huge hidden sizes
    # on v7x's 64 MiB), switch big layers to a streamed K/N-tiled matmul.
    tm_cap = max((budget - w_bytes) // per_row_bytes, 8)

    align = 8 if x_itemsize >= 4 else (16 if x_itemsize == 2 else 32)
    ncores = _num_parallel_cores()
    m_al = _round_up(m, align)
    tm = _round_up(pl.cdiv(m_al, ncores), align)               # >= ncores parallel steps
    tm = min(tm, _round_up(int(tile_m), align), max(align, (tm_cap // align) * align))
    tm = max(tm, align)
    m_pad = _round_up(m, tm)
    x_p = jnp.pad(x, ((0, m_pad - m), (0, 0))) if m_pad != m else x
    grid = (m_pad // tm,)

    vmem_limit = int(min(vmem_cap,
                         max(w_bytes + tm * per_row_bytes + (8 << 20), 16 << 20)))

    # --- cost estimate (helps XLA overlap this small custom call) ------------
    flops = 2 * m_pad * sum(w.shape[0] * w.shape[1] for w in padded_ws)
    transcendentals = m_pad * sum(w.shape[1] for w in padded_ws[:-1])
    bytes_accessed = (int(x_p.size) * x_itemsize + w_bytes
                      + m_pad * n_last_pad * out_itemsize)
    cost = pl.CostEstimate(flops=flops, transcendentals=transcendentals,
                           bytes_accessed=bytes_accessed)

    kernel = functools.partial(_fused_mlp_kernel, num_layers=num_layers)

    def run(single_buffer_weights):
        def const_spec(shape):
            # Constant blocks: fetched once, kept VMEM-resident across all tiles.
            if single_buffer_weights:
                return pl.BlockSpec(shape, lambda i: (0, 0),
                                    pipeline_mode=pl.Buffered(1))
            return pl.BlockSpec(shape, lambda i: (0, 0))

        in_specs = [pl.BlockSpec((tm, k), lambda i: (i, 0)),
                    const_spec(bias_stack.shape)]
        in_specs += [const_spec(w.shape) for w in padded_ws]

        return pl.pallas_call(
            kernel,
            out_shape=jax.ShapeDtypeStruct((m_pad, n_last_pad), x.dtype),
            grid=grid,
            in_specs=in_specs,
            out_specs=pl.BlockSpec((tm, n_last_pad), lambda i: (i, 0)),
            compiler_params=pltpu.CompilerParams(
                dimension_semantics=("parallel",),   # shards batch tiles across TCs (v7x)
                vmem_limit_bytes=vmem_limit),
            cost_estimate=cost,
        )(x_p, bias_stack, *padded_ws)

    try:
        out = jax.block_until_ready(run(single_buffer_weights=True))
    except Exception:
        # Fallback for JAX versions without BlockSpec pipeline_mode support.
        out = run(single_buffer_weights=False)

    return out[:m, :n_out]


def init_mlp_params(key, input_size, hidden_sizes, output_size, dtype=jnp.float32):
    """Deterministic init matching nn.Linear's U(-1/sqrt(fan_in), 1/sqrt(fan_in))."""
    sizes = [input_size] + list(hidden_sizes) + [output_size]
    params = []
    for fan_in, fan_out in zip(sizes[:-1], sizes[1:]):
        key, kw, kb = jax.random.split(key, 3)
        bound = 1.0 / (fan_in ** 0.5)
        w = jax.random.uniform(kw, (fan_in, fan_out), dtype, -bound, bound)
        b = jax.random.uniform(kb, (fan_out,), dtype, -bound, bound)
        params.append((w, b))
    return params


if __name__ == "__main__":
    # Shapes consistent with the module: input=32, hidden=[64, 64], output=16,
    # dropout=0.1 (eval mode -> identity).  batch=256 exercises batch tiling.
    batch, input_size = 256, 32
    hidden_sizes = [64, 64]
    output_size = 16

    key = jax.random.PRNGKey(0)
    kx, kp = jax.random.split(key)
    x = jax.random.normal(kx, (batch, input_size), jnp.float32)
    params = init_mlp_params(kp, input_size, hidden_sizes, output_size)

    # Pure-JAX reference (full-precision matmuls to match the f32 kernel path).
    ref = x
    for i, (w, b) in enumerate(params):
        ref = jnp.dot(ref, w, precision=jax.lax.Precision.HIGHEST) + b
        if i != len(params) - 1:
            ref = jnp.tanh(ref)

    # f32 path.
    y = mlp_forward(x, params)
    jax.block_until_ready(y)
    assert y.shape == (batch, output_size)
    assert jnp.allclose(y, ref, atol=2e-4, rtol=2e-4), "f32 mismatch vs reference"

    # Tiny / non-aligned batch (padding path).
    y_small = mlp_forward(x[:8], params)
    jax.block_until_ready(y_small)
    assert jnp.allclose(y_small, ref[:8], atol=2e-4, rtol=2e-4), "small-batch mismatch"

    # bf16 MXU-operand path (the v6e/v7x throughput lever); f32 accumulation.
    y_bf16 = mlp_forward(x, params, matmul_dtype=jnp.bfloat16)
    jax.block_until_ready(y_bf16)
    assert jnp.allclose(y_bf16, ref, atol=1e-1, rtol=1e-1), "bf16 mismatch vs reference"

    print("KERNEL_OK")
</pallas_src>

<mosaic_0001>
module attributes {stable_mosaic.version = 11 : i64} {
  func.func @_fused_mlp_kernel(%arg0: i32, %arg1: memref<256x32xf32, #tpu.memory_space<vmem>>, %arg2: memref<3x128xf32, #tpu.memory_space<vmem>>, %arg3: memref<32x128xf32, #tpu.memory_space<vmem>>, %arg4: memref<128x128xf32, #tpu.memory_space<vmem>>, %arg5: memref<128x128xf32, #tpu.memory_space<vmem>>, %arg6: memref<256x128xf32, #tpu.memory_space<vmem>>) attributes {dimension_semantics = [#tpu.dimension_semantics<parallel>], iteration_bounds = array<i64: 1>, scalar_prefetch = 0 : i64, scratch_operands = 0 : i64, tpu.core_type = #tpu.core_type<tc>, window_params = [{transform_indices = @transform_0, window_bounds = array<i64: 256, 32>}, {pipeline_mode = #tpu.pipeline_mode<synchronous>, transform_indices = @transform_1, window_bounds = array<i64: 3, 128>}, {pipeline_mode = #tpu.pipeline_mode<synchronous>, transform_indices = @transform_2, window_bounds = array<i64: 32, 128>}, {pipeline_mode = #tpu.pipeline_mode<synchronous>, transform_indices = @transform_3, window_bounds = array<i64: 128, 128>}, {pipeline_mode = #tpu.pipeline_mode<synchronous>, transform_indices = @transform_4, window_bounds = array<i64: 128, 128>}, {transform_indices = @transform_5, window_bounds = array<i64: 256, 128>}]} {
    %c0 = arith.constant 0 : index
    %c0_0 = arith.constant 0 : index
    %0 = vector.load %arg1[%c0, %c0_0] : memref<256x32xf32, #tpu.memory_space<vmem>>, vector<256x32xf32>
    %c0_1 = arith.constant 0 : index
    %c0_2 = arith.constant 0 : index
    %1 = vector.load %arg3[%c0_1, %c0_2] : memref<32x128xf32, #tpu.memory_space<vmem>>, vector<32x128xf32>
    %cst = arith.constant dense<0.000000e+00> : vector<256x128xf32>
    %2 = tpu.matmul %0, %1, %cst {dimension_numbers = #tpu.dot_dimension_numbers<[1], [0], [0], [1], [0, 0, 1, 1], [], []>} : vector<256x32xf32>, vector<32x128xf32>, vector<256x128xf32> -> vector<256x128xf32>
    %c0_3 = arith.constant 0 : index
    %c0_4 = arith.constant 0 : index
    %3 = vector.load %arg2[%c0_3, %c0_4] : memref<3x128xf32, #tpu.memory_space<vmem>>, vector<1x128xf32>
    %4 = vector.shape_cast %3 : vector<1x128xf32> to vector<128xf32>
    %5 = vector.shape_cast %4 : vector<128xf32> to vector<1x128xf32>
    %6 = vector.broadcast %5 : vector<1x128xf32> to vector<256x128xf32>
    %7 = arith.addf %2, %6 : vector<256x128xf32>
    %8 = math.tanh %7 : vector<256x128xf32>
    %c0_5 = arith.constant 0 : index
    %c0_6 = arith.constant 0 : index
    %9 = vector.load %arg4[%c0_5, %c0_6] : memref<128x128xf32, #tpu.memory_space<vmem>>, vector<128x128xf32>
    %cst_7 = arith.constant dense<0.000000e+00> : vector<256x128xf32>
    %10 = tpu.matmul %8, %9, %cst_7 {dimension_numbers = #tpu.dot_dimension_numbers<[1], [0], [0], [1], [0, 0, 1, 1], [], []>} : vector<256x128xf32>, vector<128x128xf32>, vector<256x128xf32> -> vector<256x128xf32>
    %c1 = arith.constant 1 : index
    %c0_8 = arith.constant 0 : index
    %11 = vector.load %arg2[%c1, %c0_8] : memref<3x128xf32, #tpu.memory_space<vmem>>, vector<1x128xf32>
    %12 = vector.shape_cast %11 : vector<1x128xf32> to vector<128xf32>
    %13 = vector.shape_cast %12 : vector<128xf32> to vector<1x128xf32>
    %14 = vector.broadcast %13 : vector<1x128xf32> to vector<256x128xf32>
    %15 = arith.addf %10, %14 : vector<256x128xf32>
    %16 = math.tanh %15 : vector<256x128xf32>
    %c0_9 = arith.constant 0 : index
    %c0_10 = arith.constant 0 : index
    %17 = vector.load %arg5[%c0_9, %c0_10] : memref<128x128xf32, #tpu.memory_space<vmem>>, vector<128x128xf32>
    %cst_11 = arith.constant dense<0.000000e+00> : vector<256x128xf32>
    %18 = tpu.matmul %16, %17, %cst_11 {dimension_numbers = #tpu.dot_dimension_numbers<[1], [0], [0], [1], [0, 0, 1, 1], [], []>} : vector<256x128xf32>, vector<128x128xf32>, vector<256x128xf32> -> vector<256x128xf32>
    %c2 = arith.constant 2 : index
    %c0_12 = arith.constant 0 : index
    %19 = vector.load %arg2[%c2, %c0_12] : memref<3x128xf32, #tpu.memory_space<vmem>>, vector<1x128xf32>
    %20 = vector.shape_cast %19 : vector<1x128xf32> to vector<128xf32>
    %21 = vector.shape_cast %20 : vector<128xf32> to vector<1x128xf32>
    %22 = vector.broadcast %21 : vector<1x128xf32> to vector<256x128xf32>
    %23 = arith.addf %18, %22 : vector<256x128xf32>
    %c0_13 = arith.constant 0 : index
    %c0_14 = arith.constant 0 : index
    %24 = vector.load %arg6[%c0_13, %c0_14] : memref<256x128xf32, #tpu.memory_space<vmem>>, vector<256x128xf32>
    tpu.vector_store %arg6[%c0_13, %c0_14], %23 {strides = array<i32>} : memref<256x128xf32, #tpu.memory_space<vmem>>, vector<256x128xf32>,
    return
  }
  func.func @transform_0(%arg0: i32) -> (i32, i32) {
    %c0_i32 = arith.constant 0 : i32
    %c0_i32_0 = arith.constant 0 : i32
    return %arg0, %c0_i32 : i32, i32
  }
  func.func @transform_1(%arg0: i32) -> (i32, i32) {
    %c0_i32 = arith.constant 0 : i32
    %c0_i32_0 = arith.constant 0 : i32
    %c0_i32_1 = arith.constant 0 : i32
    return %c0_i32, %c0_i32_0 : i32, i32
  }
  func.func @transform_2(%arg0: i32) -> (i32, i32) {
    %c0_i32 = arith.constant 0 : i32
    %c0_i32_0 = arith.constant 0 : i32
    %c0_i32_1 = arith.constant 0 : i32
    return %c0_i32, %c0_i32_0 : i32, i32
  }
  func.func @transform_3(%arg0: i32) -> (i32, i32) {
    %c0_i32 = arith.constant 0 : i32
    %c0_i32_0 = arith.constant 0 : i32
    %c0_i32_1 = arith.constant 0 : i32
    return %c0_i32, %c0_i32_0 : i32, i32
  }
  func.func @transform_4(%arg0: i32) -> (i32, i32) {
    %c0_i32 = arith.constant 0 : i32
    %c0_i32_0 = arith.constant 0 : i32
    %c0_i32_1 = arith.constant 0 : i32
    return %c0_i32, %c0_i32_0 : i32, i32
  }
  func.func @transform_5(%arg0: i32) -> (i32, i32) {
    %c0_i32 = arith.constant 0 : i32
    %c0_i32_0 = arith.constant 0 : i32
    return %arg0, %c0_i32 : i32, i32
  }
}

module attributes {stable_mosaic.version = 11 : i64} {
  func.func @_fused_mlp_kernel(%arg0: i32, %arg1: memref<256x32xf32, #tpu.memory_space<vmem>>, %arg2: memref<3x128xf32, #tpu.memory_space<vmem>>, %arg3: memref<32x128xf32, #tpu.memory_space<vmem>>, %arg4: memref<128x128xf32, #tpu.memory_space<vmem>>, %arg5: memref<128x128xf32, #tpu.memory_space<vmem>>, %arg6: memref<256x128xf32, #tpu.memory_space<vmem>>) attributes {dimension_semantics = [#tpu.dimension_semantics<parallel>], iteration_bounds = array<i64: 1>, scalar_prefetch = 0 : i64, scratch_operands = 0 : i64, tpu.core_type = #tpu.core_type<tc>, window_params = [{transform_indices = @transform_0, window_bounds = array<i64: 256, 32>}, {pipeline_mode = #tpu.pipeline_mode<synchronous>, transform_indices = @transform_1, window_bounds = array<i64: 3, 128>}, {pipeline_mode = #tpu.pipeline_mode<synchronous>, transform_indices = @transform_2, window_bounds = array<i64: 32, 128>}, {pipeline_mode = #tpu.pipeline_mode<synchronous>, transform_indices = @transform_3, window_bounds = array<i64: 128, 128>}, {pipeline_mode = #tpu.pipeline_mode<synchronous>, transform_indices = @transform_4, window_bounds = array<i64: 128, 128>}, {transform_indices = @transform_5, window_bounds = array<i64: 256, 128>}]} {
    %c0 = arith.constant 0 : index
    %c0_0 = arith.constant 0 : index
    %0 = vector.load %arg1[%c0, %c0_0] : memref<256x32xf32, #tpu.memory_space<vmem>>, vector<256x32xf32>
    %c0_1 = arith.constant 0 : index
    %c0_2 = arith.constant 0 : index
    %1 = vector.load %arg3[%c0_1, %c0_2] : memref<32x128xf32, #tpu.memory_space<vmem>>, vector<32x128xf32>
    %cst = arith.constant dense<0.000000e+00> : vector<256x128xf32>
    %2 = tpu.matmul %0, %1, %cst {dimension_numbers = #tpu.dot_dimension_numbers<[1], [0], [0], [1], [0, 0, 1, 1], [], []>} : vector<256x32xf32>, vector<32x128xf32>, vector<256x128xf32> -> vector<256x128xf32>
    %c0_3 = arith.constant 0 : index
    %c0_4 = arith.constant 0 : index
    %3 = vector.load %arg2[%c0_3, %c0_4] : memref<3x128xf32, #tpu.memory_space<vmem>>, vector<1x128xf32>
    %4 = vector.shape_cast %3 : vector<1x128xf32> to vector<128xf32>
    %5 = vector.shape_cast %4 : vector<128xf32> to vector<1x128xf32>
    %6 = vector.broadcast %5 : vector<1x128xf32> to vector<256x128xf32>
    %7 = arith.addf %2, %6 : vector<256x128xf32>
    %8 = math.tanh %7 : vector<256x128xf32>
    %c0_5 = arith.constant 0 : index
    %c0_6 = arith.constant 0 : index
    %9 = vector.load %arg4[%c0_5, %c0_6] : memref<128x128xf32, #tpu.memory_space<vmem>>, vector<128x128xf32>
    %cst_7 = arith.constant dense<0.000000e+00> : vector<256x128xf32>
    %10 = tpu.matmul %8, %9, %cst_7 {dimension_numbers = #tpu.dot_dimension_numbers<[1], [0], [0], [1], [0, 0, 1, 1], [], []>} : vector<256x128xf32>, vector<128x128xf32>, vector<256x128xf32> -> vector<256x128xf32>
    %c1 = arith.constant 1 : index
    %c0_8 = arith.constant 0 : index
    %11 = vector.load %arg2[%c1, %c0_8] : memref<3x128xf32, #tpu.memory_space<vmem>>, vector<1x128xf32>
    %12 = vector.shape_cast %11 : vector<1x128xf32> to vector<128xf32>
    %13 = vector.shape_cast %12 : vector<128xf32> to vector<1x128xf32>
    %14 = vector.broadcast %13 : vector<1x128xf32> to vector<256x128xf32>
    %15 = arith.addf %10, %14 : vector<256x128xf32>
    %16 = math.tanh %15 : vector<256x128xf32>
    %c0_9 = arith.constant 0 : index
    %c0_10 = arith.constant 0 : index
    %17 = vector.load %arg5[%c0_9, %c0_10] : memref<128x128xf32, #tpu.memory_space<vmem>>, vector<128x128xf32>
    %cst_11 = arith.constant dense<0.000000e+00> : vector<256x128xf32>
    %18 = tpu.matmul %16, %17, %cst_11 {dimension_numbers = #tpu.dot_dimension_numbers<[1], [0], [0], [1], [0, 0, 1, 1], [], []>} : vector<256x128xf32>, vector<128x128xf32>, vector<256x128xf32> -> vector<256x128xf32>
    %c2 = arith.constant 2 : index
    %c0_12 = arith.constant 0 : index
    %19 = vector.load %arg2[%c2, %c0_12] : memref<3x128xf32, #tpu.memory_space<vmem>>, vector<1x128xf32>
    %20 = vector.shape_cast %19 : vector<1x128xf32> to vector<128xf32>
    %21 = vector.shape_cast %20 : vector<128xf32> to vector<1x128xf32>
    %22 = vector.broadcast %21 : vector<1x128xf32> to vector<256x128xf32>
    %23 = arith.addf %18, %22 : vector<256x128xf32>
    %c0_13 = arith.constant 0 : index
    %c0_14 = arith.constant 0 : index
    %24 = vector.load %arg6[%c0_13, %c0_14] : memref<256x128xf32, #tpu.memory_space<vmem>>, vector<256x128xf32>
    tpu.vector_store %arg6[%c0_13, %c0_14], %23 {strides = array<i32>} : memref<256x128xf32, #tpu.memory_space<vmem>>, vector<256x128xf32>,
    return
  }
  func.func @transform_0(%arg0: i32) -> (i32, i32) {
    %c0_i32 = arith.constant 0 : i32
    %c0_i32_0 = arith.constant 0 : i32
    return %arg0, %c0_i32 : i32, i32
  }
  func.func @transform_1(%arg0: i32) -> (i32, i32) {
    %c0_i32 = arith.constant 0 : i32
    %c0_i32_0 = arith.constant 0 : i32
    %c0_i32_1 = arith.constant 0 : i32
    return %c0_i32, %c0_i32_0 : i32, i32
  }
  func.func @transform_2(%arg0: i32) -> (i32, i32) {
    %c0_i32 = arith.constant 0 : i32
    %c0_i32_0 = arith.constant 0 : i32
    %c0_i32_1 = arith.constant 0 : i32
    return %c0_i32, %c0_i32_0 : i32, i32
  }
  func.func @transform_3(%arg0: i32) -> (i32, i32) {
    %c0_i32 = arith.constant 0 : i32
    %c0_i32_0 = arith.constant 0 : i32
    %c0_i32_1 = arith.constant 0 : i32
    return %c0_i32, %c0_i32_0 : i32, i32
  }
  func.func @transform_4(%arg0: i32) -> (i32, i32) {
    %c0_i32 = arith.constant 0 : i32
    %c0_i32_0 = arith.constant 0 : i32
    %c0_i32_1 = arith.constant 0 : i32
    return %c0_i32, %c0_i32_0 : i32, i32
  }
  func.func @transform_5(%arg0: i32) -> (i32, i32) {
    %c0_i32 = arith.constant 0 : i32
    %c0_i32_0 = arith.constant 0 : i32
    return %arg0, %c0_i32 : i32, i32
  }
}

</mosaic_0001>

<bundles_post_ra>
// kernel: tpu_custom_call.1
= control target key start
LH: loop header
LB: loop body
LE: loop exit
PB: predicated region body
PF: predicated region fallthrough
CT: control target
= control target key end

     0   :  { %vm62_vm0 = vcmask 261120   ;;  %s2036_s0 = inlined_call_operand.vmem [shape: f32[256,32], index: 0, kind: input, shape index: {}]   ;;  %s2037_s1 = inlined_call_operand.vmem [shape: f32[3,128], index: 1, kind: input, shape index: {}]   ;;  %s2038_s2 = inlined_call_operand.vmem [shape: f32[32,128], index: 2, kind: input, shape index: {}]   ;;  %s2039_s3 = inlined_call_operand.vmem [shape: f32[128,128], index: 3, kind: input, shape index: {}]   ;;  %s2040_s4 = inlined_call_operand.vmem [shape: f32[128,128], index: 4, kind: input, shape index: {}]   ;;  %s2041_s5 = inlined_call_operand.hbm [shape: f32[256,128], index: 5, kind: output, shape index: {}]  }
   0x1   :  { %v53_v0 = vld [vmem:[%s2038_s2] sm:$0xff]  ;;  %v54_v1 = vld [vmem:[%s2038_s2 + $0x8] sm:$0xff]  ;;  %v55_v2 = vld [vmem:[%s2038_s2 + $0x10] sm:$0xff] }
   0x2   :  { %v1371_v3 = vpack.c.bf16 %v54_v1, %v53_v0  ;;  %v56_v4 = vld [vmem:[%s2038_s2 + $0x18] sm:$0xff]  ;;  %v21_v5 = vld [vmem:[%s2036_s0] sm:$0xff]  ;;  %v22_v8 = vld [vmem:[%s2036_s0 + $0x8] sm:$0xff] }
   0x3   :  { %v1375_v6 = vpack.c.bf16 %v56_v4, %v55_v2  ;;  %1163 = vmatprep.mubr.msk.f32.mxu0 %vm62_vm0, %v21_v5  ;;  %v37_v7 = vld [vmem:[%s2036_s0 + $0x80] sm:$0xff]  ;;  %v38_v9 = vld [vmem:[%s2036_s0 + $0x88] sm:$0xff]  ;;  %v23_v10 = vld [vmem:[%s2036_s0 + $0x10] sm:$0xff] }
   0x4   :  { %1372 = vmatprep.subr.bf16.mxu0 %v1371_v3  ;;  %1443 = vmatprep.subr.bf16.mxu1 %v1371_v3  ;;  %v39_v11 = vld [vmem:[%s2036_s0 + $0x90] sm:$0xff]  ;;  %v24_v12 = vld [vmem:[%s2036_s0 + $0x18] sm:$0xff]  ;;  %v416_v14 = vld [vmem:[%s2039_s3] sm:$0xff] }
   0x5   :  { %1374 = vmatpush3.bf16.msra.mxu0 %v1371_v3  ;;  %1445 = vmatpush3.bf16.msra.mxu1 %v1371_v3  ;;  %v40_v13 = vld [vmem:[%s2036_s0 + $0x98] sm:$0xff]  ;;  %v417_v15 = vld [vmem:[%s2039_s3 + $0x8] sm:$0xff]  ;;  %v25_v16 = vld [vmem:[%s2036_s0 + $0x20] sm:$0xff] }
   0x6   :  { %1376 = vmatprep.subr.bf16.mxu0 %v1375_v6  ;;  %1444 = vmatprep.subr.bf16.mxu1 %v1375_v6  ;;  %v41_v17 = vld [vmem:[%s2036_s0 + $0xa0] sm:$0xff]  ;;  %v1379_v18 = vpack.c.bf16 %v417_v15, %v416_v14  ;;  %v418_v19 = vld [vmem:[%s2039_s3 + $0x10] sm:$0xff]  ;;  %v419_v20 = vld [vmem:[%s2039_s3 + $0x18] sm:$0xff] }
   0x7   :  { %1187 = vmatprep.mubr.msk.f32.mxu1 %vm62_vm0, %v37_v7 }
   0x9   :  { %1378 = vmatpush3.bf16.msra.mxu0 %v1375_v6  ;;  %1446 = vmatpush3.bf16.msra.mxu1 %v1375_v6 }
   0xc   :  { %1164 = vmatmul.mubr.msk.f32.vlgmr.msra.gmra.mrb[0].mxu0 %vm62_vm0, %v22_v8  ;;  %1188 = vmatmul.mubr.msk.f32.vlgmr.msra.gmra.mrb[0].mxu1 %vm62_vm0, %v38_v9 }
   0xd   :  { %1166 = vmatprep.mubr.msk.f32.mxu0 %vm62_vm0, %v23_v10  ;;  %1190 = vmatprep.mubr.msk.f32.mxu1 %vm62_vm0, %v39_v11 }
  0x10   :  { %1167 = vmatmul.mubr.msk.f32.gmra.mrb[2].mxu0 %vm62_vm0, %v24_v12  ;;  %1191 = vmatmul.mubr.msk.f32.gmra.mrb[2].mxu1 %vm62_vm0, %v40_v13 }
  0x11   :  { %10 = vsyncpa [#allocation3], 0  ;;  %1169 = vmatprep.mubr.msk.f32.mxu0 %vm62_vm0, %v25_v16  ;;  %v26_v21 = vld [vmem:[%s2036_s0 + $0x28] sm:$0xff]  ;;  %1193 = vmatprep.mubr.msk.f32.mxu1 %vm62_vm0, %v41_v17  ;;  %v27_v23 = vld [vmem:[%s2036_s0 + $0x30] sm:$0xff]  ;;  %v1383_v25 = vpack.c.bf16 %v419_v20, %v418_v19 }
  0x12   :  { %v42_v22 = vld [vmem:[%s2036_s0 + $0xa8] sm:$0xff]  ;;  %v43_v24 = vld [vmem:[%s2036_s0 + $0xb0] sm:$0xff]  ;;  %1380 = vmatprep.subr.bf16.mxu1 %v1379_v18  ;;  %v420_v26 = vld [vmem:[%s2039_s3 + $0x20] sm:$0xff] }
  0x13   :  { %1382 = vmatpush3.bf16.msra.mxu1 %v1379_v18  ;;  %v421_v27 = vld [vmem:[%s2039_s3 + $0x28] sm:$0xff]  ;;  %v28_v28 = vld [vmem:[%s2036_s0 + $0x38] sm:$0xff]  ;;  %v29_v30 = vld [vmem:[%s2036_s0 + $0x40] sm:$0xff] }
  0x14   :  { %1170 = vmatmul.mubr.msk.f32.gmra.mrb[4].mxu0 %vm62_vm0, %v26_v21  ;;  %1194 = vmatmul.mubr.msk.f32.gmra.mrb[4].mxu1 %vm62_vm0, %v42_v22  ;;  %v44_v29 = vld [vmem:[%s2036_s0 + $0xb8] sm:$0xff]  ;;  %v45_v31 = vld [vmem:[%s2036_s0 + $0xc0] sm:$0xff]  ;;  %v1387_v32 = vpack.c.bf16 %v421_v27, %v420_v26  ;;  %v422_v33 = vld [vmem:[%s2039_s3 + $0x30] sm:$0xff] }
  0x15   :  { %1172 = vmatprep.mubr.msk.f32.mxu0 %vm62_vm0, %v27_v23  ;;  %1196 = vmatprep.mubr.msk.f32.mxu1 %vm62_vm0, %v43_v24  ;;  %v423_v34 = vld [vmem:[%s2039_s3 + $0x38] sm:$0xff]  ;;  %v30_v35 = vld [vmem:[%s2036_s0 + $0x48] sm:$0xff]  ;;  %v31_v37 = vld [vmem:[%s2036_s0 + $0x50] sm:$0xff] }
  0x16   :  { %1384 = vmatprep.subr.bf16.mxu1 %v1383_v25  ;;  %v46_v36 = vld [vmem:[%s2036_s0 + $0xc8] sm:$0xff]  ;;  %v47_v38 = vld [vmem:[%s2036_s0 + $0xd0] sm:$0xff]  ;;  %v1391_v39 = vpack.c.bf16 %v423_v34, %v422_v33  ;;  %v424_v40 = vld [vmem:[%s2039_s3 + $0x40] sm:$0xff] }
  0x17   :  { %1386 = vmatpush3.bf16.msra.mxu1 %v1383_v25  ;;  %v425_v41 = vld [vmem:[%s2039_s3 + $0x48] sm:$0xff]  ;;  %v32_v42 = vld [vmem:[%s2036_s0 + $0x58] sm:$0xff]  ;;  %v33_v44 = vld [vmem:[%s2036_s0 + $0x60] sm:$0xff] }
  0x18   :  { %1173 = vmatmul.mubr.msk.f32.gmra.mrb[6].mxu0 %vm62_vm0, %v28_v28  ;;  %1197 = vmatmul.mubr.msk.f32.gmra.mrb[6].mxu1 %vm62_vm0, %v44_v29  ;;  %v48_v43 = vld [vmem:[%s2036_s0 + $0xd8] sm:$0xff]  ;;  %v49_v45 = vld [vmem:[%s2036_s0 + $0xe0] sm:$0xff]  ;;  %v1395_v46 = vpack.c.bf16 %v425_v41, %v424_v40  ;;  %v34_v47 = vld [vmem:[%s2036_s0 + $0x68] sm:$0xff] }
  0x19   :  { %1175 = vmatprep.mubr.msk.f32.mxu0 %vm62_vm0, %v29_v30  ;;  %1199 = vmatprep.mubr.msk.f32.mxu1 %vm62_vm0, %v45_v31  ;;  %v50_v48 = vld [vmem:[%s2036_s0 + $0xe8] sm:$0xff]  ;;  %v35_v49 = vld [vmem:[%s2036_s0 + $0x70] sm:$0xff]  ;;  %v36_v51 = vld [vmem:[%s2036_s0 + $0x78] sm:$0xff] }
  0x1a   :  { %1388 = vmatprep.subr.bf16.mxu1 %v1387_v32  ;;  %v51_v50 = vld [vmem:[%s2036_s0 + $0xf0] sm:$0xff]  ;;  %v52_v52 = vld [vmem:[%s2036_s0 + $0xf8] sm:$0xff]  ;;  %v428_v56 = vld [vmem:[%s2039_s3 + $0x60] sm:$0xff] }
  0x1b   :  { %1390 = vmatpush3.bf16.msra.mxu1 %v1387_v32  ;;  %v426_v53 = vld [vmem:[%s2039_s3 + $0x50] sm:$0xff]  ;;  %v427_v54 = vld [vmem:[%s2039_s3 + $0x58] sm:$0xff]  ;;  %v429_v57 = vld [vmem:[%s2039_s3 + $0x68] sm:$0xff] }
  0x1c   :  { %1176 = vmatmul.mubr.msk.f32.gmra.mrb[8].mxu0 %vm62_vm0, %v30_v35  ;;  %1200 = vmatmul.mubr.msk.f32.gmra.mrb[8].mxu1 %vm62_vm0, %v46_v36  ;;  %v1399_v55 = vpack.c.bf16 %v427_v54, %v426_v53  ;;  %v1403_v58 = vpack.c.bf16 %v429_v57, %v428_v56  ;;  %v430_v59 = vld [vmem:[%s2039_s3 + $0x70] sm:$0xff]  ;;  %v431_v60 = vld [vmem:[%s2039_s3 + $0x78] sm:$0xff]  ;;  %v694_v62 = vld [vmem:[%s2040_s4] sm:$0xff] }
  0x1d   :  { %1178 = vmatprep.mubr.msk.f32.mxu0 %vm62_vm0, %v31_v37  ;;  %1202 = vmatprep.mubr.msk.f32.mxu1 %vm62_vm0, %v47_v38  ;;  %v1407_v61 = vpack.c.bf16 %v431_v60, %v430_v59  ;;  %v695_v63 = vld [vmem:[%s2040_s4 + $0x8] sm:$0xff]  ;;  %v696_v0 = vld [vmem:[%s2040_s4 + $0x10] sm:$0xff]  ;;  %v697_v2 = vld [vmem:[%s2040_s4 + $0x18] sm:$0xff] }
  0x1e   :  { %1392 = vmatprep.subr.bf16.mxu1 %v1391_v39  ;;  %v1411_v1 = vpack.c.bf16 %v695_v63, %v694_v62  ;;  %v1415_v3 = vpack.c.bf16 %v697_v2, %v696_v0  ;;  %v698_v4 = vld [vmem:[%s2040_s4 + $0x20] sm:$0xff]  ;;  %v699_v5 = vld [vmem:[%s2040_s4 + $0x28] sm:$0xff]  ;;  %v700_v7 = vld [vmem:[%s2040_s4 + $0x30] sm:$0xff] }
  0x1f   :  { %1394 = vmatpush3.bf16.msra.mxu1 %v1391_v39  ;;  %v1419_v6 = vpack.c.bf16 %v699_v5, %v698_v4  ;;  %v701_v8 = vld [vmem:[%s2040_s4 + $0x38] sm:$0xff]  ;;  %v702_v10 = vld [vmem:[%s2040_s4 + $0x40] sm:$0xff]  ;;  %v703_v11 = vld [vmem:[%s2040_s4 + $0x48] sm:$0xff] }
  0x20   :  { %1179 = vmatmul.mubr.msk.f32.gmra.mrb[10].mxu0 %vm62_vm0, %v32_v42  ;;  %1203 = vmatmul.mubr.msk.f32.gmra.mrb[10].mxu1 %vm62_vm0, %v48_v43  ;;  %v1423_v9 = vpack.c.bf16 %v701_v8, %v700_v7  ;;  %v1427_v12 = vpack.c.bf16 %v703_v11, %v702_v10  ;;  %v1856_v13 = vld [vmem:[%s2037_s1] ss:$0 sm:$0xff] }
  0x21   :  { %1181 = vmatprep.mubr.msk.f32.mxu0 %vm62_vm0, %v33_v44  ;;  %1205 = vmatprep.mubr.msk.f32.mxu1 %vm62_vm0, %v49_v45 }
  0x22   :  { %1396 = vmatprep.subr.bf16.mxu1 %v1395_v46  ;;  %1412 = vmatprep.subr.bf16.mxu0 %v1411_v1 }
  0x23   :  { %1398 = vmatpush3.bf16.msra.mxu1 %v1395_v46  ;;  %1414 = vmatpush3.bf16.msra.mxu0 %v1411_v1 }
  0x24   :  { %1182 = vmatmul.mubr.msk.f32.gmra.mrb[12].mxu0 %vm62_vm0, %v34_v47  ;;  %1206 = vmatmul.mubr.msk.f32.gmra.mrb[12].mxu1 %vm62_vm0, %v50_v48 }
  0x25   :  { %1184 = vmatprep.mubr.msk.f32.mxu0 %vm62_vm0, %v35_v49  ;;  %1208 = vmatprep.mubr.msk.f32.mxu1 %vm62_vm0, %v51_v50 }
  0x26   :  { %1400 = vmatprep.subr.bf16.mxu1 %v1399_v55  ;;  %1416 = vmatprep.subr.bf16.mxu0 %v1415_v3 }
  0x27   :  { %1402 = vmatpush3.bf16.msra.mxu1 %v1399_v55  ;;  %1418 = vmatpush3.bf16.msra.mxu0 %v1415_v3 }
  0x28   :  { %1185 = vmatmul.mubr.msk.f32.gmra.mrb[14].mxu0 %vm62_vm0, %v36_v51  ;;  %1209 = vmatmul.mubr.msk.f32.gmra.mrb[14].mxu1 %vm62_vm0, %v52_v52 }
  0x29   :  { %1404 = vmatprep.subr.bf16.mxu1 %v1403_v58  ;;  %1420 = vmatprep.subr.bf16.mxu0 %v1419_v6 }
  0x2b   :  { %1406 = vmatpush3.bf16.msra.mxu1 %v1403_v58  ;;  %1422 = vmatpush3.bf16.msra.mxu0 %v1419_v6 }
  0x2c   :  { %1408 = vmatprep.subr.bf16.mxu1 %v1407_v61  ;;  %1424 = vmatprep.subr.bf16.mxu0 %v1423_v9 }
  0x2f   :  { %1410 = vmatpush3.bf16.msra.mxu1 %v1407_v61  ;;  %1426 = vmatpush3.bf16.msra.mxu0 %v1423_v9 }
  0x30   :  { %1428 = vmatprep.subr.bf16.mxu0 %v1427_v12 }
  0x33   :  { %1430 = vmatpush3.bf16.msra.mxu0 %v1427_v12 }
  0xdf   :  { %v1165_v14 = vpop.f32.mrb[0].mxu0  ;;  %v1858_v15 = vpop.f32.mrb[0].mxu1 }
  0xe0   :  { %v231_v16 = vadd.f32 %v1165_v14, %v1856_v13  ;;  %v225_v17 = vpop.f32.mrb[1].mxu0  ;;  %v1861_v18 = vpop.f32.mrb[1].mxu1  ;;  %v311_v10 = vadd.f32 %v1858_v15, %v1856_v13 }
  0xe1   :  { %v226_v19 = vadd.f32 %v1856_v13, %v225_v17  ;;  %v306_v0 = vadd.f32 %v1856_v13, %v1861_v18 }
  0xe3   :  { %1450 = vtanh.f32 %v226_v19  ;;  %v1168_v20 = vpop.f32.mrb[2].mxu0  ;;  %v1864_v21 = vpop.f32.mrb[2].mxu1 }
  0xe4   :  { %1452 = vtanh.f32 %v231_v16  ;;  %v241_v22 = vadd.f32 %v1168_v20, %v1856_v13  ;;  %v235_v23 = vpop.f32.mrb[3].mxu0  ;;  %v1867_v24 = vpop.f32.mrb[3].mxu1  ;;  %v321_v16 = vadd.f32 %v1864_v21, %v1856_v13 }
  0xe5   :  { %v236_v25 = vadd.f32 %v1856_v13, %v235_v23  ;;  %v316_v9 = vadd.f32 %v1856_v13, %v1867_v24 }
  0xe7   :  { %1454 = vtanh.f32 %v236_v25  ;;  %v1171_v26 = vpop.f32.mrb[4].mxu0  ;;  %v1870_v27 = vpop.f32.mrb[4].mxu1 }
  0xe8   :  { %1456 = vtanh.f32 %v241_v22  ;;  %v251_v28 = vadd.f32 %v1171_v26, %v1856_v13  ;;  %v245_v29 = vpop.f32.mrb[5].mxu0  ;;  %v1873_v30 = vpop.f32.mrb[5].mxu1  ;;  %v331_v20 = vadd.f32 %v1870_v27, %v1856_v13 }
  0xe9   :  { %v246_v31 = vadd.f32 %v1856_v13, %v245_v29  ;;  %v326_v14 = vadd.f32 %v1856_v13, %v1873_v30 }
  0xeb   :  { %1458 = vtanh.f32 %v246_v31  ;;  %v1174_v32 = vpop.f32.mrb[6].mxu0  ;;  %v1876_v33 = vpop.f32.mrb[6].mxu1 }
  0xec   :  { %1460 = vtanh.f32 %v251_v28  ;;  %v261_v34 = vadd.f32 %v1174_v32, %v1856_v13  ;;  %v255_v35 = vpop.f32.mrb[7].mxu0  ;;  %v1879_v36 = vpop.f32.mrb[7].mxu1  ;;  %v341_v24 = vadd.f32 %v1876_v33, %v1856_v13 }
  0xed   :  { %v1451_v37 = vpop.eup %1450  ;;  %v256_v38 = vadd.f32 %v1856_v13, %v255_v35  ;;  %v336_v15 = vadd.f32 %v1856_v13, %v1879_v36 }
  0xee   :  { %v1453_v39 = vpop.eup %1452  ;;  %1243 = vmatprep.mubr.f32.mxu1 %v1451_v37 }
  0xef   :  { %1462 = vtanh.f32 %v256_v38  ;;  %v1177_v40 = vpop.f32.mrb[8].mxu0  ;;  %1244 = vmatmul.mubr.f32.vlgmr.msra.gmra.mrb[16].mxu1 %v1453_v39  ;;  %v1882_v41 = vpop.f32.mrb[8].mxu1 }
  0xf0   :  { %1464 = vtanh.f32 %v261_v34  ;;  %v271_v42 = vadd.f32 %v1177_v40, %v1856_v13  ;;  %v265_v43 = vpop.f32.mrb[9].mxu0  ;;  %v1885_v44 = vpop.f32.mrb[9].mxu1  ;;  %v351_v28 = vadd.f32 %v1882_v41, %v1856_v13 }
  0xf1   :  { %v1455_v45 = vpop.eup %1454  ;;  %v266_v46 = vadd.f32 %v1856_v13, %v265_v43  ;;  %v346_v21 = vadd.f32 %v1856_v13, %v1885_v44 }
  0xf2   :  { %v1457_v47 = vpop.eup %1456  ;;  %1246 = vmatprep.mubr.f32.mxu1 %v1455_v45 }
  0xf3   :  { %1466 = vtanh.f32 %v266_v46  ;;  %v1180_v48 = vpop.f32.mrb[10].mxu0  ;;  %1247 = vmatmul.mubr.f32.gmra.mrb[18].mxu1 %v1457_v47  ;;  %v1888_v49 = vpop.f32.mrb[10].mxu1  ;;  %v705_v47 = vld [vmem:[%s2040_s4 + $0x58] sm:$0xff] }
  0xf4   :  { %1468 = vtanh.f32 %v271_v42  ;;  %v281_v50 = vadd.f32 %v1180_v48, %v1856_v13  ;;  %v275_v51 = vpop.f32.mrb[11].mxu0  ;;  %v1891_v52 = vpop.f32.mrb[11].mxu1  ;;  %v361_v32 = vadd.f32 %v1888_v49, %v1856_v13  ;;  %v706_v49 = vld [vmem:[%s2040_s4 + $0x60] sm:$0xff] }
  0xf5   :  { %v1459_v53 = vpop.eup %1458  ;;  %v276_v54 = vadd.f32 %v1856_v13, %v275_v51  ;;  %v356_v27 = vadd.f32 %v1856_v13, %v1891_v52  ;;  %v708_v52 = vld [vmem:[%s2040_s4 + $0x70] sm:$0xff] }
  0xf6   :  { %v1461_v55 = vpop.eup %1460  ;;  %1249 = vmatprep.mubr.f32.mxu1 %v1459_v53  ;;  %v709_v53 = vld [vmem:[%s2040_s4 + $0x78] sm:$0xff] }
  0xf7   :  { %1470 = vtanh.f32 %v276_v54  ;;  %v1183_v56 = vpop.f32.mrb[12].mxu0  ;;  %1250 = vmatmul.mubr.f32.gmra.mrb[20].mxu1 %v1461_v55  ;;  %v1894_v57 = vpop.f32.mrb[12].mxu1  ;;  %v1439_v54 = vpack.c.bf16 %v709_v53, %v708_v52  ;;  %v1953_v55 = vld [vmem:[%s2037_s1 + $0x1] ss:$0 sm:$0xff] }
  0xf8   :  { %1472 = vtanh.f32 %v281_v50  ;;  %v291_v58 = vadd.f32 %v1183_v56, %v1856_v13  ;;  %v285_v59 = vpop.f32.mrb[13].mxu0  ;;  %v365_v60 = vpop.f32.mrb[13].mxu1  ;;  %v371_v36 = vadd.f32 %v1894_v57, %v1856_v13  ;;  %v707_v50 = vld [vmem:[%s2040_s4 + $0x68] sm:$0xff] }
  0xf9   :  { %v1463_v61 = vpop.eup %1462  ;;  %v286_v62 = vadd.f32 %v1856_v13, %v285_v59  ;;  %v366_v31 = vadd.f32 %v1856_v13, %v365_v60  ;;  %v1435_v51 = vpack.c.bf16 %v707_v50, %v706_v49 }
  0xfa   :  { %v1465_v63 = vpop.eup %1464  ;;  %1252 = vmatprep.mubr.f32.mxu1 %v1463_v61 }
  0xfb   :  { %1474 = vtanh.f32 %v286_v62  ;;  %v1186_v1 = vpop.f32.mrb[14].mxu0  ;;  %1253 = vmatmul.mubr.f32.gmra.mrb[22].mxu1 %v1465_v63  ;;  %v1900_v2 = vpop.f32.mrb[14].mxu1 }
  0xfc   :  { %1476 = vtanh.f32 %v291_v58  ;;  %v301_v3 = vadd.f32 %v1186_v1, %v1856_v13  ;;  %v295_v4 = vpop.f32.mrb[15].mxu0  ;;  %v375_v5 = vpop.f32.mrb[15].mxu1  ;;  %v381_v39 = vadd.f32 %v1900_v2, %v1856_v13 }
  0xfd   :  { %v1467_v6 = vpop.eup %1466  ;;  %v296_v7 = vadd.f32 %v1856_v13, %v295_v4  ;;  %1478 = vtanh.f32 %v306_v0  ;;  %v376_v35 = vadd.f32 %v1856_v13, %v375_v5  ;;  %v704_v13 = vld [vmem:[%s2040_s4 + $0x50] sm:$0xff] }
  0xfe   :  { %v1469_v8 = vpop.eup %1468  ;;  %1255 = vmatprep.mubr.f32.mxu1 %v1467_v6  ;;  %v1431_v48 = vpack.c.bf16 %v705_v47, %v704_v13 }
  0xff   :  { %1480 = vtanh.f32 %v296_v7  ;;  %1256 = vmatmul.mubr.f32.gmra.mrb[24].mxu1 %v1469_v8 }
 0x100   :  { %1482 = vtanh.f32 %v301_v3  ;;  %1432 = vmatprep.subr.bf16.mxu0 %v1431_v48 }
 0x101   :  { %v1471_v11 = vpop.eup %1470  ;;  %1484 = vtanh.f32 %v316_v9  ;;  %1434 = vmatpush3.bf16.msra.mxu0 %v1431_v48 }
 0x102   :  { %v1473_v12 = vpop.eup %1472  ;;  %1258 = vmatprep.mubr.f32.mxu1 %v1471_v11  ;;  %1486 = vtanh.f32 %v311_v10  ;;  %1436 = vmatprep.subr.bf16.mxu0 %v1435_v51 }
 0x103   :  { %1259 = vmatmul.mubr.f32.gmra.mrb[26].mxu1 %v1473_v12  ;;  %1488 = vtanh.f32 %v326_v14 }
 0x104   :  { %1490 = vtanh.f32 %v321_v16 }
 0x105   :  { %v1475_v17 = vpop.eup %1474  ;;  %1492 = vtanh.f32 %v336_v15  ;;  %1438 = vmatpush3.bf16.msra.mxu0 %v1435_v51 }
 0x106   :  { %v1477_v18 = vpop.eup %1476  ;;  %1261 = vmatprep.mubr.f32.mxu1 %v1475_v17  ;;  %1494 = vtanh.f32 %v331_v20  ;;  %1440 = vmatprep.subr.bf16.mxu0 %v1439_v54 }
 0x107   :  { %1262 = vmatmul.mubr.f32.gmra.mrb[28].mxu1 %v1477_v18  ;;  %v1479_v19 = vpop.eup %1478  ;;  %1496 = vtanh.f32 %v346_v21 }
 0x108   :  { %1498 = vtanh.f32 %v341_v24 }
 0x109   :  { %v1481_v22 = vpop.eup %1480  ;;  %1500 = vtanh.f32 %v356_v27  ;;  %1442 = vmatpush3.bf16.msra.mxu0 %v1439_v54 }
 0x10a   :  { %v1483_v23 = vpop.eup %1482  ;;  %1264 = vmatprep.mubr.f32.mxu1 %v1481_v22  ;;  %1502 = vtanh.f32 %v351_v28 }
 0x10b   :  { %1265 = vmatmul.mubr.f32.gmra.mrb[30].mxu1 %v1483_v23  ;;  %v1485_v25 = vpop.eup %1484  ;;  %1504 = vtanh.f32 %v366_v31 }
 0x10c   :  { %1267 = vmatprep.mubr.f32.mxu1 %v1479_v19  ;;  %v1487_v26 = vpop.eup %1486  ;;  %1506 = vtanh.f32 %v361_v32 }
 0x10d   :  { %v1489_v29 = vpop.eup %1488  ;;  %1508 = vtanh.f32 %v376_v35 }
 0x10e   :  { %v1491_v30 = vpop.eup %1490  ;;  %1510 = vtanh.f32 %v371_v36 }
 0x10f   :  { %1268 = vmatmul.mubr.f32.gmra.mrb[32].mxu1 %v1487_v26  ;;  %v1493_v33 = vpop.eup %1492  ;;  %1512 = vtanh.f32 %v381_v39 }
 0x110   :  { %1270 = vmatprep.mubr.f32.mxu1 %v1485_v25  ;;  %v1495_v34 = vpop.eup %1494 }
 0x111   :  { %v1497_v37 = vpop.eup %1496 }
 0x112   :  { %v1499_v38 = vpop.eup %1498 }
 0x113   :  { %1271 = vmatmul.mubr.f32.gmra.mrb[34].mxu1 %v1491_v30  ;;  %v1501_v40 = vpop.eup %1500 }
 0x114   :  { %1273 = vmatprep.mubr.f32.mxu1 %v1489_v29  ;;  %v1503_v41 = vpop.eup %1502 }
 0x115   :  { %v1505_v42 = vpop.eup %1504 }
 0x116   :  { %v1507_v43 = vpop.eup %1506 }
 0x117   :  { %1274 = vmatmul.mubr.f32.gmra.mrb[36].mxu1 %v1495_v34  ;;  %v1509_v44 = vpop.eup %1508 }
 0x118   :  { %1276 = vmatprep.mubr.f32.mxu1 %v1493_v33  ;;  %v1511_v45 = vpop.eup %1510 }
 0x119   :  { %v1513_v46 = vpop.eup %1512 }
 0x11b   :  { %1277 = vmatmul.mubr.f32.gmra.mrb[38].mxu1 %v1499_v38 }
 0x11c   :  { %1279 = vmatprep.mubr.f32.mxu1 %v1497_v37 }
 0x11f   :  { %1280 = vmatmul.mubr.f32.gmra.mrb[40].mxu1 %v1503_v41 }
 0x120   :  { %1282 = vmatprep.mubr.f32.mxu1 %v1501_v40 }
 0x123   :  { %1283 = vmatmul.mubr.f32.gmra.mrb[42].mxu1 %v1507_v43 }
 0x124   :  { %1285 = vmatprep.mubr.f32.mxu1 %v1505_v42 }
 0x127   :  { %1286 = vmatmul.mubr.f32.gmra.mrb[44].mxu1 %v1511_v45 }
 0x128   :  { %1288 = vmatprep.mubr.f32.mxu1 %v1509_v44 }
 0x12b   :  { %1289 = vmatmul.mubr.f32.gmra.mrb[46].mxu1 %v1513_v46 }
 0x1c2   :  { %v1245_v56 = vpop.f32.mrb[16].mxu1 }
 0x1c3   :  { %v509_v57 = vadd.f32 %v1245_v56, %v1953_v55  ;;  %v503_v58 = vpop.f32.mrb[17].mxu1 }
 0x1c4   :  { %v504_v59 = vadd.f32 %v1953_v55, %v503_v58 }
 0x1c6   :  { %1514 = vtanh.f32 %v504_v59  ;;  %v1248_v60 = vpop.f32.mrb[18].mxu1 }
 0x1c7   :  { %1516 = vtanh.f32 %v509_v57  ;;  %v519_v61 = vadd.f32 %v1248_v60, %v1953_v55  ;;  %v513_v62 = vpop.f32.mrb[19].mxu1 }
 0x1c8   :  { %v514_v63 = vadd.f32 %v1953_v55, %v513_v62 }
 0x1ca   :  { %1518 = vtanh.f32 %v514_v63  ;;  %v1251_v0 = vpop.f32.mrb[20].mxu1 }
 0x1cb   :  { %1520 = vtanh.f32 %v519_v61  ;;  %v529_v1 = vadd.f32 %v1251_v0, %v1953_v55  ;;  %v523_v2 = vpop.f32.mrb[21].mxu1 }
 0x1cc   :  { %v524_v3 = vadd.f32 %v1953_v55, %v523_v2 }
 0x1ce   :  { %1522 = vtanh.f32 %v524_v3  ;;  %v1254_v4 = vpop.f32.mrb[22].mxu1 }
 0x1cf   :  { %1524 = vtanh.f32 %v529_v1  ;;  %v539_v5 = vadd.f32 %v1254_v4, %v1953_v55  ;;  %v533_v6 = vpop.f32.mrb[23].mxu1 }
 0x1d0   :  { %v1515_v7 = vpop.eup %1514  ;;  %v534_v8 = vadd.f32 %v1953_v55, %v533_v6 }
 0x1d1   :  { %v1517_v9 = vpop.eup %1516  ;;  %1323 = vmatprep.mubr.f32.mxu0 %v1515_v7 }
 0x1d2   :  { %1526 = vtanh.f32 %v534_v8  ;;  %v1257_v10 = vpop.f32.mrb[24].mxu1  ;;  %1324 = vmatmul.mubr.f32.vlgmr.msra.gmra.mrb[16].mxu0 %v1517_v9 }
 0x1d3   :  { %1528 = vtanh.f32 %v539_v5  ;;  %v549_v11 = vadd.f32 %v1257_v10, %v1953_v55  ;;  %v543_v12 = vpop.f32.mrb[25].mxu1 }
 0x1d4   :  { %v1519_v14 = vpop.eup %1518  ;;  %v544_v16 = vadd.f32 %v1953_v55, %v543_v12 }
 0x1d5   :  { %v1521_v17 = vpop.eup %1520  ;;  %1326 = vmatprep.mubr.f32.mxu0 %v1519_v14 }
 0x1d6   :  { %1530 = vtanh.f32 %v544_v16  ;;  %v1260_v18 = vpop.f32.mrb[26].mxu1  ;;  %1327 = vmatmul.mubr.f32.gmra.mrb[18].mxu0 %v1521_v17 }
 0x1d7   :  { %1532 = vtanh.f32 %v549_v11  ;;  %v559_v15 = vadd.f32 %v1260_v18, %v1953_v55  ;;  %v553_v19 = vpop.f32.mrb[27].mxu1 }
 0x1d8   :  { %v1523_v20 = vpop.eup %1522  ;;  %v554_v22 = vadd.f32 %v1953_v55, %v553_v19 }
 0x1d9   :  { %v1525_v23 = vpop.eup %1524  ;;  %1329 = vmatprep.mubr.f32.mxu0 %v1523_v20 }
 0x1da   :  { %1534 = vtanh.f32 %v554_v22  ;;  %v1263_v21 = vpop.f32.mrb[28].mxu1  ;;  %1330 = vmatmul.mubr.f32.gmra.mrb[20].mxu0 %v1525_v23 }
 0x1db   :  { %1536 = vtanh.f32 %v559_v15  ;;  %v569_v24 = vadd.f32 %v1263_v21, %v1953_v55  ;;  %v563_v25 = vpop.f32.mrb[29].mxu1 }
 0x1dc   :  { %v1527_v26 = vpop.eup %1526  ;;  %v564_v27 = vadd.f32 %v1953_v55, %v563_v25 }
 0x1dd   :  { %v1529_v28 = vpop.eup %1528  ;;  %1332 = vmatprep.mubr.f32.mxu0 %v1527_v26 }
 0x1de   :  { %1538 = vtanh.f32 %v564_v27  ;;  %v1266_v29 = vpop.f32.mrb[30].mxu1  ;;  %1333 = vmatmul.mubr.f32.gmra.mrb[22].mxu0 %v1529_v28 }
 0x1df   :  { %1540 = vtanh.f32 %v569_v24  ;;  %v579_v30 = vadd.f32 %v1266_v29, %v1953_v55  ;;  %v573_v31 = vpop.f32.mrb[31].mxu1 }
 0x1e0   :  { %v1531_v32 = vpop.eup %1530  ;;  %v574_v33 = vadd.f32 %v1953_v55, %v573_v31 }
 0x1e1   :  { %v1533_v34 = vpop.eup %1532  ;;  %1335 = vmatprep.mubr.f32.mxu0 %v1531_v32 }
 0x1e2   :  { %1542 = vtanh.f32 %v574_v33  ;;  %v1269_v35 = vpop.f32.mrb[32].mxu1  ;;  %1336 = vmatmul.mubr.f32.gmra.mrb[24].mxu0 %v1533_v34 }
 0x1e3   :  { %1544 = vtanh.f32 %v579_v30  ;;  %v589_v36 = vadd.f32 %v1269_v35, %v1953_v55  ;;  %v583_v37 = vpop.f32.mrb[33].mxu1 }
 0x1e4   :  { %v1535_v38 = vpop.eup %1534  ;;  %v584_v39 = vadd.f32 %v1953_v55, %v583_v37 }
 0x1e5   :  { %v1537_v40 = vpop.eup %1536  ;;  %1338 = vmatprep.mubr.f32.mxu0 %v1535_v38 }
 0x1e6   :  { %1546 = vtanh.f32 %v584_v39  ;;  %v1272_v41 = vpop.f32.mrb[34].mxu1  ;;  %1339 = vmatmul.mubr.f32.gmra.mrb[26].mxu0 %v1537_v40 }
 0x1e7   :  { %1548 = vtanh.f32 %v589_v36  ;;  %v599_v42 = vadd.f32 %v1272_v41, %v1953_v55  ;;  %v593_v43 = vpop.f32.mrb[35].mxu1 }
 0x1e8   :  { %v1539_v44 = vpop.eup %1538  ;;  %v594_v45 = vadd.f32 %v1953_v55, %v593_v43 }
 0x1e9   :  { %v1541_v46 = vpop.eup %1540  ;;  %1341 = vmatprep.mubr.f32.mxu0 %v1539_v44 }
 0x1ea   :  { %1550 = vtanh.f32 %v594_v45  ;;  %v1275_v13 = vpop.f32.mrb[36].mxu1  ;;  %1342 = vmatmul.mubr.f32.gmra.mrb[28].mxu0 %v1541_v46 }
 0x1eb   :  { %1552 = vtanh.f32 %v599_v42  ;;  %v609_v47 = vadd.f32 %v1275_v13, %v1953_v55  ;;  %v603_v48 = vpop.f32.mrb[37].mxu1 }
 0x1ec   :  { %v1543_v49 = vpop.eup %1542  ;;  %v604_v50 = vadd.f32 %v1953_v55, %v603_v48 }
 0x1ed   :  { %v1545_v51 = vpop.eup %1544  ;;  %1344 = vmatprep.mubr.f32.mxu0 %v1543_v49 }
 0x1ee   :  { %1554 = vtanh.f32 %v604_v50  ;;  %v1278_v52 = vpop.f32.mrb[38].mxu1  ;;  %1345 = vmatmul.mubr.f32.gmra.mrb[30].mxu0 %v1545_v51 }
 0x1ef   :  { %1556 = vtanh.f32 %v609_v47  ;;  %v619_v53 = vadd.f32 %v1278_v52, %v1953_v55  ;;  %v613_v54 = vpop.f32.mrb[39].mxu1 }
 0x1f0   :  { %v1547_v56 = vpop.eup %1546  ;;  %v614_v57 = vadd.f32 %v1953_v55, %v613_v54 }
 0x1f1   :  { %v1549_v58 = vpop.eup %1548  ;;  %1347 = vmatprep.mubr.f32.mxu0 %v1547_v56 }
 0x1f2   :  { %1558 = vtanh.f32 %v614_v57  ;;  %v1281_v59 = vpop.f32.mrb[40].mxu1  ;;  %1348 = vmatmul.mubr.f32.gmra.mrb[32].mxu0 %v1549_v58 }
 0x1f3   :  { %1560 = vtanh.f32 %v619_v53  ;;  %v629_v60 = vadd.f32 %v1281_v59, %v1953_v55  ;;  %v623_v61 = vpop.f32.mrb[41].mxu1 }
 0x1f4   :  { %v1551_v62 = vpop.eup %1550  ;;  %v624_v63 = vadd.f32 %v1953_v55, %v623_v61 }
 0x1f5   :  { %v1553_v0 = vpop.eup %1552  ;;  %1350 = vmatprep.mubr.f32.mxu0 %v1551_v62 }
 0x1f6   :  { %1562 = vtanh.f32 %v624_v63  ;;  %v1284_v1 = vpop.f32.mrb[42].mxu1  ;;  %1351 = vmatmul.mubr.f32.gmra.mrb[34].mxu0 %v1553_v0 }
 0x1f7   :  { %1564 = vtanh.f32 %v629_v60  ;;  %v639_v2 = vadd.f32 %v1284_v1, %v1953_v55  ;;  %v633_v3 = vpop.f32.mrb[43].mxu1 }
 0x1f8   :  { %v1555_v4 = vpop.eup %1554  ;;  %v634_v5 = vadd.f32 %v1953_v55, %v633_v3 }
 0x1f9   :  { %v1557_v6 = vpop.eup %1556  ;;  %1353 = vmatprep.mubr.f32.mxu0 %v1555_v4 }
 0x1fa   :  { %1566 = vtanh.f32 %v634_v5  ;;  %v1287_v7 = vpop.f32.mrb[44].mxu1  ;;  %1354 = vmatmul.mubr.f32.gmra.mrb[36].mxu0 %v1557_v6 }
 0x1fb   :  { %1568 = vtanh.f32 %v639_v2  ;;  %v649_v8 = vadd.f32 %v1287_v7, %v1953_v55  ;;  %v643_v9 = vpop.f32.mrb[45].mxu1 }
 0x1fc   :  { %v1559_v10 = vpop.eup %1558  ;;  %v644_v11 = vadd.f32 %v1953_v55, %v643_v9 }
 0x1fd   :  { %v1561_v12 = vpop.eup %1560  ;;  %1356 = vmatprep.mubr.f32.mxu0 %v1559_v10 }
 0x1fe   :  { %1570 = vtanh.f32 %v644_v11  ;;  %v1290_v14 = vpop.f32.mrb[46].mxu1  ;;  %1357 = vmatmul.mubr.f32.gmra.mrb[38].mxu0 %v1561_v12 }
 0x1ff   :  { %1572 = vtanh.f32 %v649_v8  ;;  %v659_v16 = vadd.f32 %v1290_v14, %v1953_v55  ;;  %v653_v17 = vpop.f32.mrb[47].mxu1 }
 0x200   :  { %v1563_v18 = vpop.eup %1562  ;;  %v654_v15 = vadd.f32 %v1953_v55, %v653_v17  ;;  %v1990_v55 = vld [vmem:[%s2037_s1 + $0x2] ss:$0 sm:$0xff]  ;;  %s1602_s1 = smov [#allocation2]  }
 0x201   :  { %v1565_v19 = vpop.eup %1564  ;;  %1359 = vmatprep.mubr.f32.mxu0 %v1563_v18  ;;  %s977_s25 = sshll.u32 %s1602_s1, 4  ;;  %s978_s25 = int_to_ptr.vmem [resolvable:$true] %s977_s25 }
 0x202   :  { %1574 = vtanh.f32 %v654_v15  ;;  %1360 = vmatmul.mubr.f32.gmra.mrb[40].mxu0 %v1565_v19  ;;  %s1578_s26 = scalar_lea.vmem %s978_s25, 4096  ;;  %p1583_p1 = scmp.lt.s32.totalorder %s978_s25, %s978_s25 }
 0x203   :  { %1576 = vtanh.f32 %v659_v16  ;;  %p1579_p0 = scmp.ne.s32.totalorder %s978_s25, %s1578_s26  ;;  %p1584_p2 = scmp.lt.s32.totalorder %s1578_s26, %s1578_s26 }
 0x204   :  { %v1567_v20 = vpop.eup %1566 }
 0x205   :  { %v1569_v22 = vpop.eup %1568  ;;  %1362 = vmatprep.mubr.f32.mxu0 %v1567_v20  ;;  %p1585_p3 = por %p1584_p2, %p1583_p1 }
 0x206   :  { %1363 = vmatmul.mubr.f32.gmra.mrb[42].mxu0 %v1569_v22 }
 0x207   :  { %p1586_p4 = pnand %p1585_p3, %p1579_p0 }
 0x208   :  { %v1571_v23 = vpop.eup %1570 }
 0x209   :  { %v1573_v21 = vpop.eup %1572  ;;  %1365 = vmatprep.mubr.f32.mxu0 %v1571_v23 }
 0x20a   :  { %1366 = vmatmul.mubr.f32.gmra.mrb[44].mxu0 %v1573_v21 }
 0x20c   :  { %v1575_v24 = vpop.eup %1574 }
 0x20d   :  { %v1577_v25 = vpop.eup %1576  ;;  %1368 = vmatprep.mubr.f32.mxu0 %v1575_v24 }
 0x20e   :  { %1369 = vmatmul.mubr.f32.gmra.mrb[46].mxu0 %v1577_v25 }
 0x2a5   :  { %v1325_v26 = vpop.f32.mrb[16].mxu0 }
 0x2a6   :  { %v787_v27 = vadd.f32 %v1325_v26, %v1990_v55  ;;  %v781_v28 = vpop.f32.mrb[17].mxu0 }
 0x2a7   :  { %v782_v29 = vadd.f32 %v1990_v55, %v781_v28 }
 0x2a8   :  { %941 = vst [vmem:[#allocation2 + $0x8] sm:$0xff] %v787_v27 }
 0x2a9   :  { %940 = vst [vmem:[#allocation2] sm:$0xff] %v782_v29  ;;  %v1328_v30 = vpop.f32.mrb[18].mxu0 }
 0x2aa   :  { %v797_v31 = vadd.f32 %v1328_v30, %v1990_v55  ;;  %v791_v32 = vpop.f32.mrb[19].mxu0 }
 0x2ab   :  { %v792_v33 = vadd.f32 %v1990_v55, %v791_v32 }
 0x2ac   :  { %943 = vst [vmem:[#allocation2 + $0x18] sm:$0xff] %v797_v31 }
 0x2ad   :  { %942 = vst [vmem:[#allocation2 + $0x10] sm:$0xff] %v792_v33  ;;  %v1331_v34 = vpop.f32.mrb[20].mxu0 }
 0x2ae   :  { %v807_v35 = vadd.f32 %v1331_v34, %v1990_v55  ;;  %v801_v36 = vpop.f32.mrb[21].mxu0 }
 0x2af   :  { %v802_v37 = vadd.f32 %v1990_v55, %v801_v36 }
 0x2b0   :  { %945 = vst [vmem:[#allocation2 + $0x28] sm:$0xff] %v807_v35 }
 0x2b1   :  { %944 = vst [vmem:[#allocation2 + $0x20] sm:$0xff] %v802_v37  ;;  %v1334_v38 = vpop.f32.mrb[22].mxu0 }
 0x2b2   :  { %v817_v39 = vadd.f32 %v1334_v38, %v1990_v55  ;;  %v811_v40 = vpop.f32.mrb[23].mxu0 }
 0x2b3   :  { %v812_v41 = vadd.f32 %v1990_v55, %v811_v40 }
 0x2b4   :  { %947 = vst [vmem:[#allocation2 + $0x38] sm:$0xff] %v817_v39 }
 0x2b5   :  { %946 = vst [vmem:[#allocation2 + $0x30] sm:$0xff] %v812_v41  ;;  %v1337_v42 = vpop.f32.mrb[24].mxu0 }
 0x2b6   :  { %v827_v43 = vadd.f32 %v1337_v42, %v1990_v55  ;;  %v821_v44 = vpop.f32.mrb[25].mxu0 }
 0x2b7   :  { %v822_v45 = vadd.f32 %v1990_v55, %v821_v44 }
 0x2b8   :  { %949 = vst [vmem:[#allocation2 + $0x48] sm:$0xff] %v827_v43 }
 0x2b9   :  { %948 = vst [vmem:[#allocation2 + $0x40] sm:$0xff] %v822_v45  ;;  %v1340_v46 = vpop.f32.mrb[26].mxu0 }
 0x2ba   :  { %v837_v13 = vadd.f32 %v1340_v46, %v1990_v55  ;;  %v831_v47 = vpop.f32.mrb[27].mxu0 }
 0x2bb   :  { %v832_v48 = vadd.f32 %v1990_v55, %v831_v47 }
 0x2bc   :  { %951 = vst [vmem:[#allocation2 + $0x58] sm:$0xff] %v837_v13 }
 0x2bd   :  { %950 = vst [vmem:[#allocation2 + $0x50] sm:$0xff] %v832_v48  ;;  %v1343_v49 = vpop.f32.mrb[28].mxu0 }
 0x2be   :  { %v847_v50 = vadd.f32 %v1343_v49, %v1990_v55  ;;  %v841_v51 = vpop.f32.mrb[29].mxu0 }
 0x2bf   :  { %v842_v52 = vadd.f32 %v1990_v55, %v841_v51 }
 0x2c0   :  { %953 = vst [vmem:[#allocation2 + $0x68] sm:$0xff] %v847_v50 }
 0x2c1   :  { %952 = vst [vmem:[#allocation2 + $0x60] sm:$0xff] %v842_v52  ;;  %v1346_v53 = vpop.f32.mrb[30].mxu0 }
 0x2c2   :  { %v857_v54 = vadd.f32 %v1346_v53, %v1990_v55  ;;  %v851_v56 = vpop.f32.mrb[31].mxu0 }
 0x2c3   :  { %v852_v57 = vadd.f32 %v1990_v55, %v851_v56 }
 0x2c4   :  { %955 = vst [vmem:[#allocation2 + $0x78] sm:$0xff] %v857_v54 }
 0x2c5   :  { %954 = vst [vmem:[#allocation2 + $0x70] sm:$0xff] %v852_v57  ;;  %v1349_v58 = vpop.f32.mrb[32].mxu0 }
 0x2c6   :  { %v867_v59 = vadd.f32 %v1349_v58, %v1990_v55  ;;  %v861_v60 = vpop.f32.mrb[33].mxu0 }
 0x2c7   :  { %v862_v61 = vadd.f32 %v1990_v55, %v861_v60 }
 0x2c8   :  { %957 = vst [vmem:[#allocation2 + $0x88] sm:$0xff] %v867_v59 }
 0x2c9   :  { %956 = vst [vmem:[#allocation2 + $0x80] sm:$0xff] %v862_v61  ;;  %v1352_v62 = vpop.f32.mrb[34].mxu0 }
 0x2ca   :  { %v877_v63 = vadd.f32 %v1352_v62, %v1990_v55  ;;  %v871_v0 = vpop.f32.mrb[35].mxu0 }
 0x2cb   :  { %v872_v1 = vadd.f32 %v1990_v55, %v871_v0 }
 0x2cc   :  { %959 = vst [vmem:[#allocation2 + $0x98] sm:$0xff] %v877_v63 }
 0x2cd   :  { %958 = vst [vmem:[#allocation2 + $0x90] sm:$0xff] %v872_v1  ;;  %v1355_v2 = vpop.f32.mrb[36].mxu0 }
 0x2ce   :  { %v887_v3 = vadd.f32 %v1355_v2, %v1990_v55  ;;  %v881_v4 = vpop.f32.mrb[37].mxu0 }
 0x2cf   :  { %v882_v5 = vadd.f32 %v1990_v55, %v881_v4 }
 0x2d0   :  { %961 = vst [vmem:[#allocation2 + $0xa8] sm:$0xff] %v887_v3 }
 0x2d1   :  { %960 = vst [vmem:[#allocation2 + $0xa0] sm:$0xff] %v882_v5  ;;  %v1358_v6 = vpop.f32.mrb[38].mxu0 }
 0x2d2   :  { %v897_v7 = vadd.f32 %v1358_v6, %v1990_v55  ;;  %v891_v8 = vpop.f32.mrb[39].mxu0 }
 0x2d3   :  { %v892_v9 = vadd.f32 %v1990_v55, %v891_v8 }
 0x2d4   :  { %963 = vst [vmem:[#allocation2 + $0xb8] sm:$0xff] %v897_v7 }
 0x2d5   :  { %962 = vst [vmem:[#allocation2 + $0xb0] sm:$0xff] %v892_v9  ;;  %v1361_v10 = vpop.f32.mrb[40].mxu0 }
 0x2d6   :  { %v907_v11 = vadd.f32 %v1361_v10, %v1990_v55  ;;  %v901_v12 = vpop.f32.mrb[41].mxu0 }
 0x2d7   :  { %v902_v14 = vadd.f32 %v1990_v55, %v901_v12 }
 0x2d8   :  { %965 = vst [vmem:[#allocation2 + $0xc8] sm:$0xff] %v907_v11 }
 0x2d9   :  { %964 = vst [vmem:[#allocation2 + $0xc0] sm:$0xff] %v902_v14  ;;  %v1364_v16 = vpop.f32.mrb[42].mxu0 }
 0x2da   :  { %v917_v17 = vadd.f32 %v1364_v16, %v1990_v55  ;;  %v911_v18 = vpop.f32.mrb[43].mxu0 }
 0x2db   :  { %v912_v15 = vadd.f32 %v1990_v55, %v911_v18 }
 0x2dc   :  { %967 = vst [vmem:[#allocation2 + $0xd8] sm:$0xff] %v917_v17 }
 0x2dd   :  { %966 = vst [vmem:[#allocation2 + $0xd0] sm:$0xff] %v912_v15  ;;  %v1367_v19 = vpop.f32.mrb[44].mxu0 }
 0x2de   :  { %v927_v20 = vadd.f32 %v1367_v19, %v1990_v55  ;;  %v921_v22 = vpop.f32.mrb[45].mxu0 }
 0x2df   :  { %v922_v23 = vadd.f32 %v1990_v55, %v921_v22 }
 0x2e0   :  { %969 = vst [vmem:[#allocation2 + $0xe8] sm:$0xff] %v927_v20 }
 0x2e1   :  { %968 = vst [vmem:[#allocation2 + $0xe0] sm:$0xff] %v922_v23  ;;  %v1370_v21 = vpop.f32.mrb[46].mxu0 }
 0x2e2   :  { %v937_v24 = vadd.f32 %v1370_v21, %v1990_v55  ;;  %v931_v25 = vpop.f32.mrb[47].mxu0 }
 0x2e3   :  { %v932_v26 = vadd.f32 %v1990_v55, %v931_v25 }
 0x2e4   :  { %971 = vst [vmem:[#allocation2 + $0xf8] sm:$0xff] %v937_v24 }
 0x2e5   :  { %970 = vst [vmem:[#allocation2 + $0xf0] sm:$0xff] %v932_v26 }
 0x2e6   :  { %1589 = shalt.err (!%p1586_p4)
}
 0x2e7   :  { %s1590_s29 = scalar_lea.hbm %s2041_s5, 4096 }
 0x2e8   :  { %p1591_p5 = scmp.ne.s32.totalorder %s2041_s5, %s1590_s29  ;;  %p1594_p6 = scmp.lt.u32.totalorder %s1590_s29, %s2041_s5 }
 0x2ea   :  { %p1596_p7 = pnand %p1594_p6, %p1591_p5 }
 0x2ec   :  { %1599 = shalt.err (!%p1596_p7)
}
 0x2ed   :  { %s1603_s8 = smov 128   ;;  %s1604_s9 = smov 8  }
 0x2ee   :  { %983 = dma.vmem_to_hbm [thread:$0]  %s978_s25, 4096, %s2041_s5, [#allocation3], %s1603_s8, %s1603_s8, %s1604_s9  }
 0x2ef   :  { %1600 = dma.done.wait [#allocation3], 4096  }
 0x2f0   :  { %1601 = vsyncadd [#allocation3], 4294963200 }
 0x2f1   :  { %987 = vsyncpa [#allocation3], 1 }

// kernel: tpu_custom_call.1
= control target key start
LH: loop header
LB: loop body
LE: loop exit
PB: predicated region body
PF: predicated region fallthrough
CT: control target
= control target key end

     0   :  { %vm62_vm0 = vcmask 261120   ;;  %s2036_s0 = inlined_call_operand.vmem [shape: f32[256,32], index: 0, kind: input, shape index: {}]   ;;  %s2037_s1 = inlined_call_operand.vmem [shape: f32[3,128], index: 1, kind: input, shape index: {}]   ;;  %s2038_s2 = inlined_call_operand.vmem [shape: f32[32,128], index: 2, kind: input, shape index: {}]   ;;  %s2039_s3 = inlined_call_operand.vmem [shape: f32[128,128], index: 3, kind: input, shape index: {}]   ;;  %s2040_s4 = inlined_call_operand.vmem [shape: f32[128,128], index: 4, kind: input, shape index: {}]   ;;  %s2041_s5 = inlined_call_operand.hbm [shape: f32[256,128], index: 5, kind: output, shape index: {}]  }
   0x1   :  { %v53_v0 = vld [vmem:[%s2038_s2] sm:$0xff]  ;;  %v54_v1 = vld [vmem:[%s2038_s2 + $0x8] sm:$0xff]  ;;  %v55_v2 = vld [vmem:[%s2038_s2 + $0x10] sm:$0xff] }
   0x2   :  { %v1371_v3 = vpack.c.bf16 %v54_v1, %v53_v0  ;;  %v56_v4 = vld [vmem:[%s2038_s2 + $0x18] sm:$0xff]  ;;  %v21_v5 = vld [vmem:[%s2036_s0] sm:$0xff]  ;;  %v22_v8 = vld [vmem:[%s2036_s0 + $0x8] sm:$0xff] }
   0x3   :  { %v1375_v6 = vpack.c.bf16 %v56_v4, %v55_v2  ;;  %1163 = vmatprep.mubr.msk.f32.mxu0 %vm62_vm0, %v21_v5  ;;  %v37_v7 = vld [vmem:[%s2036_s0 + $0x80] sm:$0xff]  ;;  %v38_v9 = vld [vmem:[%s2036_s0 + $0x88] sm:$0xff]  ;;  %v23_v10 = vld [vmem:[%s2036_s0 + $0x10] sm:$0xff] }
   0x4   :  { %1372 = vmatprep.subr.bf16.mxu0 %v1371_v3  ;;  %1443 = vmatprep.subr.bf16.mxu1 %v1371_v3  ;;  %v39_v11 = vld [vmem:[%s2036_s0 + $0x90] sm:$0xff]  ;;  %v24_v12 = vld [vmem:[%s2036_s0 + $0x18] sm:$0xff]  ;;  %v416_v14 = vld [vmem:[%s2039_s3] sm:$0xff] }
   0x5   :  { %1374 = vmatpush3.bf16.msra.mxu0 %v1371_v3  ;;  %1445 = vmatpush3.bf16.msra.mxu1 %v1371_v3  ;;  %v40_v13 = vld [vmem:[%s2036_s0 + $0x98] sm:$0xff]  ;;  %v417_v15 = vld [vmem:[%s2039_s3 + $0x8] sm:$0xff]  ;;  %v25_v16 = vld [vmem:[%s2036_s0 + $0x20] sm:$0xff] }
   0x6   :  { %1376 = vmatprep.subr.bf16.mxu0 %v1375_v6  ;;  %1444 = vmatprep.subr.bf16.mxu1 %v1375_v6  ;;  %v41_v17 = vld [vmem:[%s2036_s0 + $0xa0] sm:$0xff]  ;;  %v1379_v18 = vpack.c.bf16 %v417_v15, %v416_v14  ;;  %v418_v19 = vld [vmem:[%s2039_s3 + $0x10] sm:$0xff]  ;;  %v419_v20 = vld [vmem:[%s2039_s3 + $0x18] sm:$0xff] }
   0x7   :  { %1187 = vmatprep.mubr.msk.f32.mxu1 %vm62_vm0, %v37_v7 }
   0x9   :  { %1378 = vmatpush3.bf16.msra.mxu0 %v1375_v6  ;;  %1446 = vmatpush3.bf16.msra.mxu1 %v1375_v6 }
   0xc   :  { %1164 = vmatmul.mubr.msk.f32.vlgmr.msra.gmra.mrb[0].mxu0 %vm62_vm0, %v22_v8  ;;  %1188 = vmatmul.mubr.msk.f32.vlgmr.msra.gmra.mrb[0].mxu1 %vm62_vm0, %v38_v9 }
   0xd   :  { %1166 = vmatprep.mubr.msk.f32.mxu0 %vm62_vm0, %v23_v10  ;;  %1190 = vmatprep.mubr.msk.f32.mxu1 %vm62_vm0, %v39_v11 }
  0x10   :  { %1167 = vmatmul.mubr.msk.f32.gmra.mrb[2].mxu0 %vm62_vm0, %v24_v12  ;;  %1191 = vmatmul.mubr.msk.f32.gmra.mrb[2].mxu1 %vm62_vm0, %v40_v13 }
  0x11   :  { %10 = vsyncpa [#allocation3], 0  ;;  %1169 = vmatprep.mubr.msk.f32.mxu0 %vm62_vm0, %v25_v16  ;;  %v26_v21 = vld [vmem:[%s2036_s0 + $0x28] sm:$0xff]  ;;  %1193 = vmatprep.mubr.msk.f32.mxu1 %vm62_vm0, %v41_v17  ;;  %v27_v23 = vld [vmem:[%s2036_s0 + $0x30] sm:$0xff]  ;;  %v1383_v25 = vpack.c.bf16 %v419_v20, %v418_v19 }
  0x12   :  { %v42_v22 = vld [vmem:[%s2036_s0 + $0xa8] sm:$0xff]  ;;  %v43_v24 = vld [vmem:[%s2036_s0 + $0xb0] sm:$0xff]  ;;  %1380 = vmatprep.subr.bf16.mxu1 %v1379_v18  ;;  %v420_v26 = vld [vmem:[%s2039_s3 + $0x20] sm:$0xff] }
  0x13   :  { %1382 = vmatpush3.bf16.msra.mxu1 %v1379_v18  ;;  %v421_v27 = vld [vmem:[%s2039_s3 + $0x28] sm:$0xff]  ;;  %v28_v28 = vld [vmem:[%s2036_s0 + $0x38] sm:$0xff]  ;;  %v29_v30 = vld [vmem:[%s2036_s0 + $0x40] sm:$0xff] }
  0x14   :  { %1170 = vmatmul.mubr.msk.f32.gmra.mrb[4].mxu0 %vm62_vm0, %v26_v21  ;;  %1194 = vmatmul.mubr.msk.f32.gmra.mrb[4].mxu1 %vm62_vm0, %v42_v22  ;;  %v44_v29 = vld [vmem:[%s2036_s0 + $0xb8] sm:$0xff]  ;;  %v45_v31 = vld [vmem:[%s2036_s0 + $0xc0] sm:$0xff]  ;;  %v1387_v32 = vpack.c.bf16 %v421_v27, %v420_v26  ;;  %v422_v33 = vld [vmem:[%s2039_s3 + $0x30] sm:$0xff] }
  0x15   :  { %1172 = vmatprep.mubr.msk.f32.mxu0 %vm62_vm0, %v27_v23  ;;  %1196 = vmatprep.mubr.msk.f32.mxu1 %vm62_vm0, %v43_v24  ;;  %v423_v34 = vld [vmem:[%s2039_s3 + $0x38] sm:$0xff]  ;;  %v30_v35 = vld [vmem:[%s2036_s0 + $0x48] sm:$0xff]  ;;  %v31_v37 = vld [vmem:[%s2036_s0 + $0x50] sm:$0xff] }
  0x16   :  { %1384 = vmatprep.subr.bf16.mxu1 %v1383_v25  ;;  %v46_v36 = vld [vmem:[%s2036_s0 + $0xc8] sm:$0xff]  ;;  %v47_v38 = vld [vmem:[%s2036_s0 + $0xd0] sm:$0xff]  ;;  %v1391_v39 = vpack.c.bf16 %v423_v34, %v422_v33  ;;  %v424_v40 = vld [vmem:[%s2039_s3 + $0x40] sm:$0xff] }
  0x17   :  { %1386 = vmatpush3.bf16.msra.mxu1 %v1383_v25  ;;  %v425_v41 = vld [vmem:[%s2039_s3 + $0x48] sm:$0xff]  ;;  %v32_v42 = vld [vmem:[%s2036_s0 + $0x58] sm:$0xff]  ;;  %v33_v44 = vld [vmem:[%s2036_s0 + $0x60] sm:$0xff] }
  0x18   :  { %1173 = vmatmul.mubr.msk.f32.gmra.mrb[6].mxu0 %vm62_vm0, %v28_v28  ;;  %1197 = vmatmul.mubr.msk.f32.gmra.mrb[6].mxu1 %vm62_vm0, %v44_v29  ;;  %v48_v43 = vld [vmem:[%s2036_s0 + $0xd8] sm:$0xff]  ;;  %v49_v45 = vld [vmem:[%s2036_s0 + $0xe0] sm:$0xff]  ;;  %v1395_v46 = vpack.c.bf16 %v425_v41, %v424_v40  ;;  %v34_v47 = vld [vmem:[%s2036_s0 + $0x68] sm:$0xff] }
  0x19   :  { %1175 = vmatprep.mubr.msk.f32.mxu0 %vm62_vm0, %v29_v30  ;;  %1199 = vmatprep.mubr.msk.f32.mxu1 %vm62_vm0, %v45_v31  ;;  %v50_v48 = vld [vmem:[%s2036_s0 + $0xe8] sm:$0xff]  ;;  %v35_v49 = vld [vmem:[%s2036_s0 + $0x70] sm:$0xff]  ;;  %v36_v51 = vld [vmem:[%s2036_s0 + $0x78] sm:$0xff] }
  0x1a   :  { %1388 = vmatprep.subr.bf16.mxu1 %v1387_v32  ;;  %v51_v50 = vld [vmem:[%s2036_s0 + $0xf0] sm:$0xff]  ;;  %v52_v52 = vld [vmem:[%s2036_s0 + $0xf8] sm:$0xff]  ;;  %v428_v56 = vld [vmem:[%s2039_s3 + $0x60] sm:$0xff] }
  0x1b   :  { %1390 = vmatpush3.bf16.msra.mxu1 %v1387_v32  ;;  %v426_v53 = vld [vmem:[%s2039_s3 + $0x50] sm:$0xff]  ;;  %v427_v54 = vld [vmem:[%s2039_s3 + $0x58] sm:$0xff]  ;;  %v429_v57 = vld [vmem:[%s2039_s3 + $0x68] sm:$0xff] }
  0x1c   :  { %1176 = vmatmul.mubr.msk.f32.gmra.mrb[8].mxu0 %vm62_vm0, %v30_v35  ;;  %1200 = vmatmul.mubr.msk.f32.gmra.mrb[8].mxu1 %vm62_vm0, %v46_v36  ;;  %v1399_v55 = vpack.c.bf16 %v427_v54, %v426_v53  ;;  %v1403_v58 = vpack.c.bf16 %v429_v57, %v428_v56  ;;  %v430_v59 = vld [vmem:[%s2039_s3 + $0x70] sm:$0xff]  ;;  %v431_v60 = vld [vmem:[%s2039_s3 + $0x78] sm:$0xff]  ;;  %v694_v62 = vld [vmem:[%s2040_s4] sm:$0xff] }
  0x1d   :  { %1178 = vmatprep.mubr.msk.f32.mxu0 %vm62_vm0, %v31_v37  ;;  %1202 = vmatprep.mubr.msk.f32.mxu1 %vm62_vm0, %v47_v38  ;;  %v1407_v61 = vpack.c.bf16 %v431_v60, %v430_v59  ;;  %v695_v63 = vld [vmem:[%s2040_s4 + $0x8] sm:$0xff]  ;;  %v696_v0 = vld [vmem:[%s2040_s4 + $0x10] sm:$0xff]  ;;  %v697_v2 = vld [vmem:[%s2040_s4 + $0x18] sm:$0xff] }
  0x1e   :  { %1392 = vmatprep.subr.bf16.mxu1 %v1391_v39  ;;  %v1411_v1 = vpack.c.bf16 %v695_v63, %v694_v62  ;;  %v1415_v3 = vpack.c.bf16 %v697_v2, %v696_v0  ;;  %v698_v4 = vld [vmem:[%s2040_s4 + $0x20] sm:$0xff]  ;;  %v699_v5 = vld [vmem:[%s2040_s4 + $0x28] sm:$0xff]  ;;  %v700_v7 = vld [vmem:[%s2040_s4 + $0x30] sm:$0xff] }
  0x1f   :  { %1394 = vmatpush3.bf16.msra.mxu1 %v1391_v39  ;;  %v1419_v6 = vpack.c.bf16 %v699_v5, %v698_v4  ;;  %v701_v8 = vld [vmem:[%s2040_s4 + $0x38] sm:$0xff]  ;;  %v702_v10 = vld [vmem:[%s2040_s4 + $0x40] sm:$0xff]  ;;  %v703_v11 = vld [vmem:[%s2040_s4 + $0x48] sm:$0xff] }
  0x20   :  { %1179 = vmatmul.mubr.msk.f32.gmra.mrb[10].mxu0 %vm62_vm0, %v32_v42  ;;  %1203 = vmatmul.mubr.msk.f32.gmra.mrb[10].mxu1 %vm62_vm0, %v48_v43  ;;  %v1423_v9 = vpack.c.bf16 %v701_v8, %v700_v7  ;;  %v1427_v12 = vpack.c.bf16 %v703_v11, %v702_v10  ;;  %v1856_v13 = vld [vmem:[%s2037_s1] ss:$0 sm:$0xff] }
  0x21   :  { %1181 = vmatprep.mubr.msk.f32.mxu0 %vm62_vm0, %v33_v44  ;;  %1205 = vmatprep.mubr.msk.f32.mxu1 %vm62_vm0, %v49_v45 }
  0x22   :  { %1396 = vmatprep.subr.bf16.mxu1 %v1395_v46  ;;  %1412 = vmatprep.subr.bf16.mxu0 %v1411_v1 }
  0x23   :  { %1398 = vmatpush3.bf16.msra.mxu1 %v1395_v46  ;;  %1414 = vmatpush3.bf16.msra.mxu0 %v1411_v1 }
  0x24   :  { %1182 = vmatmul.mubr.msk.f32.gmra.mrb[12].mxu0 %vm62_vm0, %v34_v47  ;;  %1206 = vmatmul.mubr.msk.f32.gmra.mrb[12].mxu1 %vm62_vm0, %v50_v48 }
  0x25   :  { %1184 = vmatprep.mubr.msk.f32.mxu0 %vm62_vm0, %v35_v49  ;;  %1208 = vmatprep.mubr.msk.f32.mxu1 %vm62_vm0, %v51_v50 }
  0x26   :  { %1400 = vmatprep.subr.bf16.mxu1 %v1399_v55  ;;  %1416 = vmatprep.subr.bf16.mxu0 %v1415_v3 }
  0x27   :  { %1402 = vmatpush3.bf16.msra.mxu1 %v1399_v55  ;;  %1418 = vmatpush3.bf16.msra.mxu0 %v1415_v3 }
  0x28   :  { %1185 = vmatmul.mubr.msk.f32.gmra.mrb[14].mxu0 %vm62_vm0, %v36_v51  ;;  %1209 = vmatmul.mubr.msk.f32.gmra.mrb[14].mxu1 %vm62_vm0, %v52_v52 }
  0x29   :  { %1404 = vmatprep.subr.bf16.mxu1 %v1403_v58  ;;  %1420 = vmatprep.subr.bf16.mxu0 %v1419_v6 }
  0x2b   :  { %1406 = vmatpush3.bf16.msra.mxu1 %v1403_v58  ;;  %1422 = vmatpush3.bf16.msra.mxu0 %v1419_v6 }
  0x2c   :  { %1408 = vmatprep.subr.bf16.mxu1 %v1407_v61  ;;  %1424 = vmatprep.subr.bf16.mxu0 %v1423_v9 }
  0x2f   :  { %1410 = vmatpush3.bf16.msra.mxu1 %v1407_v61  ;;  %1426 = vmatpush3.bf16.msra.mxu0 %v1423_v9 }
  0x30   :  { %1428 = vmatprep.subr.bf16.mxu0 %v1427_v12 }
  0x33   :  { %1430 = vmatpush3.bf16.msra.mxu0 %v1427_v12 }
  0xdf   :  { %v1165_v14 = vpop.f32.mrb[0].mxu0  ;;  %v1858_v15 = vpop.f32.mrb[0].mxu1 }
  0xe0   :  { %v231_v16 = vadd.f32 %v1165_v14, %v1856_v13  ;;  %v225_v17 = vpop.f32.mrb[1].mxu0  ;;  %v1861_v18 = vpop.f32.mrb[1].mxu1  ;;  %v311_v10 = vadd.f32 %v1858_v15, %v1856_v13 }
  0xe1   :  { %v226_v19 = vadd.f32 %v1856_v13, %v225_v17  ;;  %v306_v0 = vadd.f32 %v1856_v13, %v1861_v18 }
  0xe3   :  { %1450 = vtanh.f32 %v226_v19  ;;  %v1168_v20 = vpop.f32.mrb[2].mxu0  ;;  %v1864_v21 = vpop.f32.mrb[2].mxu1 }
  0xe4   :  { %1452 = vtanh.f32 %v231_v16  ;;  %v241_v22 = vadd.f32 %v1168_v20, %v1856_v13  ;;  %v235_v23 = vpop.f32.mrb[3].mxu0  ;;  %v1867_v24 = vpop.f32.mrb[3].mxu1  ;;  %v321_v16 = vadd.f32 %v1864_v21, %v1856_v13 }
  0xe5   :  { %v236_v25 = vadd.f32 %v1856_v13, %v235_v23  ;;  %v316_v9 = vadd.f32 %v1856_v13, %v1867_v24 }
  0xe7   :  { %1454 = vtanh.f32 %v236_v25  ;;  %v1171_v26 = vpop.f32.mrb[4].mxu0  ;;  %v1870_v27 = vpop.f32.mrb[4].mxu1 }
  0xe8   :  { %1456 = vtanh.f32 %v241_v22  ;;  %v251_v28 = vadd.f32 %v1171_v26, %v1856_v13  ;;  %v245_v29 = vpop.f32.mrb[5].mxu0  ;;  %v1873_v30 = vpop.f32.mrb[5].mxu1  ;;  %v331_v20 = vadd.f32 %v1870_v27, %v1856_v13 }
  0xe9   :  { %v246_v31 = vadd.f32 %v1856_v13, %v245_v29  ;;  %v326_v14 = vadd.f32 %v1856_v13, %v1873_v30 }
  0xeb   :  { %1458 = vtanh.f32 %v246_v31  ;;  %v1174_v32 = vpop.f32.mrb[6].mxu0  ;;  %v1876_v33 = vpop.f32.mrb[6].mxu1 }
  0xec   :  { %1460 = vtanh.f32 %v251_v28  ;;  %v261_v34 = vadd.f32 %v1174_v32, %v1856_v13  ;;  %v255_v35 = vpop.f32.mrb[7].mxu0  ;;  %v1879_v36 = vpop.f32.mrb[7].mxu1  ;;  %v341_v24 = vadd.f32 %v1876_v33, %v1856_v13 }
  0xed   :  { %v1451_v37 = vpop.eup %1450  ;;  %v256_v38 = vadd.f32 %v1856_v13, %v255_v35  ;;  %v336_v15 = vadd.f32 %v1856_v13, %v1879_v36 }
  0xee   :  { %v1453_v39 = vpop.eup %1452  ;;  %1243 = vmatprep.mubr.f32.mxu1 %v1451_v37 }
  0xef   :  { %1462 = vtanh.f32 %v256_v38  ;;  %v1177_v40 = vpop.f32.mrb[8].mxu0  ;;  %1244 = vmatmul.mubr.f32.vlgmr.msra.gmra.mrb[16].mxu1 %v1453_v39  ;;  %v1882_v41 = vpop.f32.mrb[8].mxu1 }
  0xf0   :  { %1464 = vtanh.f32 %v261_v34  ;;  %v271_v42 = vadd.f32 %v1177_v40, %v1856_v13  ;;  %v265_v43 = vpop.f32.mrb[9].mxu0  ;;  %v1885_v44 = vpop.f32.mrb[9].mxu1  ;;  %v351_v28 = vadd.f32 %v1882_v41, %v1856_v13 }
  0xf1   :  { %v1455_v45 = vpop.eup %1454  ;;  %v266_v46 = vadd.f32 %v1856_v13, %v265_v43  ;;  %v346_v21 = vadd.f32 %v1856_v13, %v1885_v44 }
  0xf2   :  { %v1457_v47 = vpop.eup %1456  ;;  %1246 = vmatprep.mubr.f32.mxu1 %v1455_v45 }
  0xf3   :  { %1466 = vtanh.f32 %v266_v46  ;;  %v1180_v48 = vpop.f32.mrb[10].mxu0  ;;  %1247 = vmatmul.mubr.f32.gmra.mrb[18].mxu1 %v1457_v47  ;;  %v1888_v49 = vpop.f32.mrb[10].mxu1  ;;  %v705_v47 = vld [vmem:[%s2040_s4 + $0x58] sm:$0xff] }
  0xf4   :  { %1468 = vtanh.f32 %v271_v42  ;;  %v281_v50 = vadd.f32 %v1180_v48, %v1856_v13  ;;  %v275_v51 = vpop.f32.mrb[11].mxu0  ;;  %v1891_v52 = vpop.f32.mrb[11].mxu1  ;;  %v361_v32 = vadd.f32 %v1888_v49, %v1856_v13  ;;  %v706_v49 = vld [vmem:[%s2040_s4 + $0x60] sm:$0xff] }
  0xf5   :  { %v1459_v53 = vpop.eup %1458  ;;  %v276_v54 = vadd.f32 %v1856_v13, %v275_v51  ;;  %v356_v27 = vadd.f32 %v1856_v13, %v1891_v52  ;;  %v708_v52 = vld [vmem:[%s2040_s4 + $0x70] sm:$0xff] }
  0xf6   :  { %v1461_v55 = vpop.eup %1460  ;;  %1249 = vmatprep.mubr.f32.mxu1 %v1459_v53  ;;  %v709_v53 = vld [vmem:[%s2040_s4 + $0x78] sm:$0xff] }
  0xf7   :  { %1470 = vtanh.f32 %v276_v54  ;;  %v1183_v56 = vpop.f32.mrb[12].mxu0  ;;  %1250 = vmatmul.mubr.f32.gmra.mrb[20].mxu1 %v1461_v55  ;;  %v1894_v57 = vpop.f32.mrb[12].mxu1  ;;  %v1439_v54 = vpack.c.bf16 %v709_v53, %v708_v52  ;;  %v1953_v55 = vld [vmem:[%s2037_s1 + $0x1] ss:$0 sm:$0xff] }
  0xf8   :  { %1472 = vtanh.f32 %v281_v50  ;;  %v291_v58 = vadd.f32 %v1183_v56, %v1856_v13  ;;  %v285_v59 = vpop.f32.mrb[13].mxu0  ;;  %v365_v60 = vpop.f32.mrb[13].mxu1  ;;  %v371_v36 = vadd.f32 %v1894_v57, %v1856_v13  ;;  %v707_v50 = vld [vmem:[%s2040_s4 + $0x68] sm:$0xff] }
  0xf9   :  { %v1463_v61 = vpop.eup %1462  ;;  %v286_v62 = vadd.f32 %v1856_v13, %v285_v59  ;;  %v366_v31 = vadd.f32 %v1856_v13, %v365_v60  ;;  %v1435_v51 = vpack.c.bf16 %v707_v50, %v706_v49 }
  0xfa   :  { %v1465_v63 = vpop.eup %1464  ;;  %1252 = vmatprep.mubr.f32.mxu1 %v1463_v61 }
  0xfb   :  { %1474 = vtanh.f32 %v286_v62  ;;  %v1186_v1 = vpop.f32.mrb[14].mxu0  ;;  %1253 = vmatmul.mubr.f32.gmra.mrb[22].mxu1 %v1465_v63  ;;  %v1900_v2 = vpop.f32.mrb[14].mxu1 }
  0xfc   :  { %1476 = vtanh.f32 %v291_v58  ;;  %v301_v3 = vadd.f32 %v1186_v1, %v1856_v13  ;;  %v295_v4 = vpop.f32.mrb[15].mxu0  ;;  %v375_v5 = vpop.f32.mrb[15].mxu1  ;;  %v381_v39 = vadd.f32 %v1900_v2, %v1856_v13 }
  0xfd   :  { %v1467_v6 = vpop.eup %1466  ;;  %v296_v7 = vadd.f32 %v1856_v13, %v295_v4  ;;  %1478 = vtanh.f32 %v306_v0  ;;  %v376_v35 = vadd.f32 %v1856_v13, %v375_v5  ;;  %v704_v13 = vld [vmem:[%s2040_s4 + $0x50] sm:$0xff] }
  0xfe   :  { %v1469_v8 = vpop.eup %1468  ;;  %1255 = vmatprep.mubr.f32.mxu1 %v1467_v6  ;;  %v1431_v48 = vpack.c.bf16 %v705_v47, %v704_v13 }
  0xff   :  { %1480 = vtanh.f32 %v296_v7  ;;  %1256 = vmatmul.mubr.f32.gmra.mrb[24].mxu1 %v1469_v8 }
 0x100   :  { %1482 = vtanh.f32 %v301_v3  ;;  %1432 = vmatprep.subr.bf16.mxu0 %v1431_v48 }
 0x101   :  { %v1471_v11 = vpop.eup %1470  ;;  %1484 = vtanh.f32 %v316_v9  ;;  %1434 = vmatpush3.bf16.msra.mxu0 %v1431_v48 }
 0x102   :  { %v1473_v12 = vpop.eup %1472  ;;  %1258 = vmatprep.mubr.f32.mxu1 %v1471_v11  ;;  %1486 = vtanh.f32 %v311_v10  ;;  %1436 = vmatprep.subr.bf16.mxu0 %v1435_v51 }
 0x103   :  { %1259 = vmatmul.mubr.f32.gmra.mrb[26].mxu1 %v1473_v12  ;;  %1488 = vtanh.f32 %v326_v14 }
 0x104   :  { %1490 = vtanh.f32 %v321_v16 }
 0x105   :  { %v1475_v17 = vpop.eup %1474  ;;  %1492 = vtanh.f32 %v336_v15  ;;  %1438 = vmatpush3.bf16.msra.mxu0 %v1435_v51 }
 0x106   :  { %v1477_v18 = vpop.eup %1476  ;;  %1261 = vmatprep.mubr.f32.mxu1 %v1475_v17  ;;  %1494 = vtanh.f32 %v331_v20  ;;  %1440 = vmatprep.subr.bf16.mxu0 %v1439_v54 }
 0x107   :  { %1262 = vmatmul.mubr.f32.gmra.mrb[28].mxu1 %v1477_v18  ;;  %v1479_v19 = vpop.eup %1478  ;;  %1496 = vtanh.f32 %v346_v21 }
 0x108   :  { %1498 = vtanh.f32 %v341_v24 }
 0x109   :  { %v1481_v22 = vpop.eup %1480  ;;  %1500 = vtanh.f32 %v356_v27  ;;  %1442 = vmatpush3.bf16.msra.mxu0 %v1439_v54 }
 0x10a   :  { %v1483_v23 = vpop.eup %1482  ;;  %1264 = vmatprep.mubr.f32.mxu1 %v1481_v22  ;;  %1502 = vtanh.f32 %v351_v28 }
 0x10b   :  { %1265 = vmatmul.mubr.f32.gmra.mrb[30].mxu1 %v1483_v23  ;;  %v1485_v25 = vpop.eup %1484  ;;  %1504 = vtanh.f32 %v366_v31 }
 0x10c   :  { %1267 = vmatprep.mubr.f32.mxu1 %v1479_v19  ;;  %v1487_v26 = vpop.eup %1486  ;;  %1506 = vtanh.f32 %v361_v32 }
 0x10d   :  { %v1489_v29 = vpop.eup %1488  ;;  %1508 = vtanh.f32 %v376_v35 }
 0x10e   :  { %v1491_v30 = vpop.eup %1490  ;;  %1510 = vtanh.f32 %v371_v36 }
 0x10f   :  { %1268 = vmatmul.mubr.f32.gmra.mrb[32].mxu1 %v1487_v26  ;;  %v1493_v33 = vpop.eup %1492  ;;  %1512 = vtanh.f32 %v381_v39 }
 0x110   :  { %1270 = vmatprep.mubr.f32.mxu1 %v1485_v25  ;;  %v1495_v34 = vpop.eup %1494 }
 0x111   :  { %v1497_v37 = vpop.eup %1496 }
 0x112   :  { %v1499_v38 = vpop.eup %1498 }
 0x113   :  { %1271 = vmatmul.mubr.f32.gmra.mrb[34].mxu1 %v1491_v30  ;;  %v1501_v40 = vpop.eup %1500 }
 0x114   :  { %1273 = vmatprep.mubr.f32.mxu1 %v1489_v29  ;;  %v1503_v41 = vpop.eup %1502 }
 0x115   :  { %v1505_v42 = vpop.eup %1504 }
 0x116   :  { %v1507_v43 = vpop.eup %1506 }
 0x117   :  { %1274 = vmatmul.mubr.f32.gmra.mrb[36].mxu1 %v1495_v34  ;;  %v1509_v44 = vpop.eup %1508 }
 0x118   :  { %1276 = vmatprep.mubr.f32.mxu1 %v1493_v33  ;;  %v1511_v45 = vpop.eup %1510 }
 0x119   :  { %v1513_v46 = vpop.eup %1512 }
 0x11b   :  { %1277 = vmatmul.mubr.f32.gmra.mrb[38].mxu1 %v1499_v38 }
 0x11c   :  { %1279 = vmatprep.mubr.f32.mxu1 %v1497_v37 }
 0x11f   :  { %1280 = vmatmul.mubr.f32.gmra.mrb[40].mxu1 %v1503_v41 }
 0x120   :  { %1282 = vmatprep.mubr.f32.mxu1 %v1501_v40 }
 0x123   :  { %1283 = vmatmul.mubr.f32.gmra.mrb[42].mxu1 %v1507_v43 }
 0x124   :  { %1285 = vmatprep.mubr.f32.mxu1 %v1505_v42 }
 0x127   :  { %1286 = vmatmul.mubr.f32.gmra.mrb[44].mxu1 %v1511_v45 }
 0x128   :  { %1288 = vmatprep.mubr.f32.mxu1 %v1509_v44 }
 0x12b   :  { %1289 = vmatmul.mubr.f32.gmra.mrb[46].mxu1 %v1513_v46 }
 0x1c2   :  { %v1245_v56 = vpop.f32.mrb[16].mxu1 }
 0x1c3   :  { %v509_v57 = vadd.f32 %v1245_v56, %v1953_v55  ;;  %v503_v58 = vpop.f32.mrb[17].mxu1 }
 0x1c4   :  { %v504_v59 = vadd.f32 %v1953_v55, %v503_v58 }
 0x1c6   :  { %1514 = vtanh.f32 %v504_v59  ;;  %v1248_v60 = vpop.f32.mrb[18].mxu1 }
 0x1c7   :  { %1516 = vtanh.f32 %v509_v57  ;;  %v519_v61 = vadd.f32 %v1248_v60, %v1953_v55  ;;  %v513_v62 = vpop.f32.mrb[19].mxu1 }
 0x1c8   :  { %v514_v63 = vadd.f32 %v1953_v55, %v513_v62 }
 0x1ca   :  { %1518 = vtanh.f32 %v514_v63  ;;  %v1251_v0 = vpop.f32.mrb[20].mxu1 }
 0x1cb   :  { %1520 = vtanh.f32 %v519_v61  ;;  %v529_v1 = vadd.f32 %v1251_v0, %v1953_v55  ;;  %v523_v2 = vpop.f32.mrb[21].mxu1 }
 0x1cc   :  { %v524_v3 = vadd.f32 %v1953_v55, %v523_v2 }
 0x1ce   :  { %1522 = vtanh.f32 %v524_v3  ;;  %v1254_v4 = vpop.f32.mrb[22].mxu1 }
 0x1cf   :  { %1524 = vtanh.f32 %v529_v1  ;;  %v539_v5 = vadd.f32 %v1254_v4, %v1953_v55  ;;  %v533_v6 = vpop.f32.mrb[23].mxu1 }
 0x1d0   :  { %v1515_v7 = vpop.eup %1514  ;;  %v534_v8 = vadd.f32 %v1953_v55, %v533_v6 }
 0x1d1   :  { %v1517_v9 = vpop.eup %1516  ;;  %1323 = vmatprep.mubr.f32.mxu0 %v1515_v7 }
 0x1d2   :  { %1526 = vtanh.f32 %v534_v8  ;;  %v1257_v10 = vpop.f32.mrb[24].mxu1  ;;  %1324 = vmatmul.mubr.f32.vlgmr.msra.gmra.mrb[16].mxu0 %v1517_v9 }
 0x1d3   :  { %1528 = vtanh.f32 %v539_v5  ;;  %v549_v11 = vadd.f32 %v1257_v10, %v1953_v55  ;;  %v543_v12 = vpop.f32.mrb[25].mxu1 }
 0x1d4   :  { %v1519_v14 = vpop.eup %1518  ;;  %v544_v16 = vadd.f32 %v1953_v55, %v543_v12 }
 0x1d5   :  { %v1521_v17 = vpop.eup %1520  ;;  %1326 = vmatprep.mubr.f32.mxu0 %v1519_v14 }
 0x1d6   :  { %1530 = vtanh.f32 %v544_v16  ;;  %v1260_v18 = vpop.f32.mrb[26].mxu1  ;;  %1327 = vmatmul.mubr.f32.gmra.mrb[18].mxu0 %v1521_v17 }
 0x1d7   :  { %1532 = vtanh.f32 %v549_v11  ;;  %v559_v15 = vadd.f32 %v1260_v18, %v1953_v55  ;;  %v553_v19 = vpop.f32.mrb[27].mxu1 }
 0x1d8   :  { %v1523_v20 = vpop.eup %1522  ;;  %v554_v22 = vadd.f32 %v1953_v55, %v553_v19 }
 0x1d9   :  { %v1525_v23 = vpop.eup %1524  ;;  %1329 = vmatprep.mubr.f32.mxu0 %v1523_v20 }
 0x1da   :  { %1534 = vtanh.f32 %v554_v22  ;;  %v1263_v21 = vpop.f32.mrb[28].mxu1  ;;  %1330 = vmatmul.mubr.f32.gmra.mrb[20].mxu0 %v1525_v23 }
 0x1db   :  { %1536 = vtanh.f32 %v559_v15  ;;  %v569_v24 = vadd.f32 %v1263_v21, %v1953_v55  ;;  %v563_v25 = vpop.f32.mrb[29].mxu1 }
 0x1dc   :  { %v1527_v26 = vpop.eup %1526  ;;  %v564_v27 = vadd.f32 %v1953_v55, %v563_v25 }
 0x1dd   :  { %v1529_v28 = vpop.eup %1528  ;;  %1332 = vmatprep.mubr.f32.mxu0 %v1527_v26 }
 0x1de   :  { %1538 = vtanh.f32 %v564_v27  ;;  %v1266_v29 = vpop.f32.mrb[30].mxu1  ;;  %1333 = vmatmul.mubr.f32.gmra.mrb[22].mxu0 %v1529_v28 }
 0x1df   :  { %1540 = vtanh.f32 %v569_v24  ;;  %v579_v30 = vadd.f32 %v1266_v29, %v1953_v55  ;;  %v573_v31 = vpop.f32.mrb[31].mxu1 }
 0x1e0   :  { %v1531_v32 = vpop.eup %1530  ;;  %v574_v33 = vadd.f32 %v1953_v55, %v573_v31 }
 0x1e1   :  { %v1533_v34 = vpop.eup %1532  ;;  %1335 = vmatprep.mubr.f32.mxu0 %v1531_v32 }
 0x1e2   :  { %1542 = vtanh.f32 %v574_v33  ;;  %v1269_v35 = vpop.f32.mrb[32].mxu1  ;;  %1336 = vmatmul.mubr.f32.gmra.mrb[24].mxu0 %v1533_v34 }
 0x1e3   :  { %1544 = vtanh.f32 %v579_v30  ;;  %v589_v36 = vadd.f32 %v1269_v35, %v1953_v55  ;;  %v583_v37 = vpop.f32.mrb[33].mxu1 }
 0x1e4   :  { %v1535_v38 = vpop.eup %1534  ;;  %v584_v39 = vadd.f32 %v1953_v55, %v583_v37 }
 0x1e5   :  { %v1537_v40 = vpop.eup %1536  ;;  %1338 = vmatprep.mubr.f32.mxu0 %v1535_v38 }
 0x1e6   :  { %1546 = vtanh.f32 %v584_v39  ;;  %v1272_v41 = vpop.f32.mrb[34].mxu1  ;;  %1339 = vmatmul.mubr.f32.gmra.mrb[26].mxu0 %v1537_v40 }
 0x1e7   :  { %1548 = vtanh.f32 %v589_v36  ;;  %v599_v42 = vadd.f32 %v1272_v41, %v1953_v55  ;;  %v593_v43 = vpop.f32.mrb[35].mxu1 }
 0x1e8   :  { %v1539_v44 = vpop.eup %1538  ;;  %v594_v45 = vadd.f32 %v1953_v55, %v593_v43 }
 0x1e9   :  { %v1541_v46 = vpop.eup %1540  ;;  %1341 = vmatprep.mubr.f32.mxu0 %v1539_v44 }
 0x1ea   :  { %1550 = vtanh.f32 %v594_v45  ;;  %v1275_v13 = vpop.f32.mrb[36].mxu1  ;;  %1342 = vmatmul.mubr.f32.gmra.mrb[28].mxu0 %v1541_v46 }
 0x1eb   :  { %1552 = vtanh.f32 %v599_v42  ;;  %v609_v47 = vadd.f32 %v1275_v13, %v1953_v55  ;;  %v603_v48 = vpop.f32.mrb[37].mxu1 }
 0x1ec   :  { %v1543_v49 = vpop.eup %1542  ;;  %v604_v50 = vadd.f32 %v1953_v55, %v603_v48 }
 0x1ed   :  { %v1545_v51 = vpop.eup %1544  ;;  %1344 = vmatprep.mubr.f32.mxu0 %v1543_v49 }
 0x1ee   :  { %1554 = vtanh.f32 %v604_v50  ;;  %v1278_v52 = vpop.f32.mrb[38].mxu1  ;;  %1345 = vmatmul.mubr.f32.gmra.mrb[30].mxu0 %v1545_v51 }
 0x1ef   :  { %1556 = vtanh.f32 %v609_v47  ;;  %v619_v53 = vadd.f32 %v1278_v52, %v1953_v55  ;;  %v613_v54 = vpop.f32.mrb[39].mxu1 }
 0x1f0   :  { %v1547_v56 = vpop.eup %1546  ;;  %v614_v57 = vadd.f32 %v1953_v55, %v613_v54 }
 0x1f1   :  { %v1549_v58 = vpop.eup %1548  ;;  %1347 = vmatprep.mubr.f32.mxu0 %v1547_v56 }
 0x1f2   :  { %1558 = vtanh.f32 %v614_v57  ;;  %v1281_v59 = vpop.f32.mrb[40].mxu1  ;;  %1348 = vmatmul.mubr.f32.gmra.mrb[32].mxu0 %v1549_v58 }
 0x1f3   :  { %1560 = vtanh.f32 %v619_v53  ;;  %v629_v60 = vadd.f32 %v1281_v59, %v1953_v55  ;;  %v623_v61 = vpop.f32.mrb[41].mxu1 }
 0x1f4   :  { %v1551_v62 = vpop.eup %1550  ;;  %v624_v63 = vadd.f32 %v1953_v55, %v623_v61 }
 0x1f5   :  { %v1553_v0 = vpop.eup %1552  ;;  %1350 = vmatprep.mubr.f32.mxu0 %v1551_v62 }
 0x1f6   :  { %1562 = vtanh.f32 %v624_v63  ;;  %v1284_v1 = vpop.f32.mrb[42].mxu1  ;;  %1351 = vmatmul.mubr.f32.gmra.mrb[34].mxu0 %v1553_v0 }
 0x1f7   :  { %1564 = vtanh.f32 %v629_v60  ;;  %v639_v2 = vadd.f32 %v1284_v1, %v1953_v55  ;;  %v633_v3 = vpop.f32.mrb[43].mxu1 }
 0x1f8   :  { %v1555_v4 = vpop.eup %1554  ;;  %v634_v5 = vadd.f32 %v1953_v55, %v633_v3 }
 0x1f9   :  { %v1557_v6 = vpop.eup %1556  ;;  %1353 = vmatprep.mubr.f32.mxu0 %v1555_v4 }
 0x1fa   :  { %1566 = vtanh.f32 %v634_v5  ;;  %v1287_v7 = vpop.f32.mrb[44].mxu1  ;;  %1354 = vmatmul.mubr.f32.gmra.mrb[36].mxu0 %v1557_v6 }
 0x1fb   :  { %1568 = vtanh.f32 %v639_v2  ;;  %v649_v8 = vadd.f32 %v1287_v7, %v1953_v55  ;;  %v643_v9 = vpop.f32.mrb[45].mxu1 }
 0x1fc   :  { %v1559_v10 = vpop.eup %1558  ;;  %v644_v11 = vadd.f32 %v1953_v55, %v643_v9 }
 0x1fd   :  { %v1561_v12 = vpop.eup %1560  ;;  %1356 = vmatprep.mubr.f32.mxu0 %v1559_v10 }
 0x1fe   :  { %1570 = vtanh.f32 %v644_v11  ;;  %v1290_v14 = vpop.f32.mrb[46].mxu1  ;;  %1357 = vmatmul.mubr.f32.gmra.mrb[38].mxu0 %v1561_v12 }
 0x1ff   :  { %1572 = vtanh.f32 %v649_v8  ;;  %v659_v16 = vadd.f32 %v1290_v14, %v1953_v55  ;;  %v653_v17 = vpop.f32.mrb[47].mxu1 }
 0x200   :  { %v1563_v18 = vpop.eup %1562  ;;  %v654_v15 = vadd.f32 %v1953_v55, %v653_v17  ;;  %v1990_v55 = vld [vmem:[%s2037_s1 + $0x2] ss:$0 sm:$0xff]  ;;  %s1602_s1 = smov [#allocation2]  }
 0x201   :  { %v1565_v19 = vpop.eup %1564  ;;  %1359 = vmatprep.mubr.f32.mxu0 %v1563_v18  ;;  %s977_s25 = sshll.u32 %s1602_s1, 4  ;;  %s978_s25 = int_to_ptr.vmem [resolvable:$true] %s977_s25 }
 0x202   :  { %1574 = vtanh.f32 %v654_v15  ;;  %1360 = vmatmul.mubr.f32.gmra.mrb[40].mxu0 %v1565_v19  ;;  %s1578_s26 = scalar_lea.vmem %s978_s25, 4096  ;;  %p1583_p1 = scmp.lt.s32.totalorder %s978_s25, %s978_s25 }
 0x203   :  { %1576 = vtanh.f32 %v659_v16  ;;  %p1579_p0 = scmp.ne.s32.totalorder %s978_s25, %s1578_s26  ;;  %p1584_p2 = scmp.lt.s32.totalorder %s1578_s26, %s1578_s26 }
 0x204   :  { %v1567_v20 = vpop.eup %1566 }
 0x205   :  { %v1569_v22 = vpop.eup %1568  ;;  %1362 = vmatprep.mubr.f32.mxu0 %v1567_v20  ;;  %p1585_p3 = por %p1584_p2, %p1583_p1 }
 0x206   :  { %1363 = vmatmul.mubr.f32.gmra.mrb[42].mxu0 %v1569_v22 }
 0x207   :  { %p1586_p4 = pnand %p1585_p3, %p1579_p0 }
 0x208   :  { %v1571_v23 = vpop.eup %1570 }
 0x209   :  { %v1573_v21 = vpop.eup %1572  ;;  %1365 = vmatprep.mubr.f32.mxu0 %v1571_v23 }
 0x20a   :  { %1366 = vmatmul.mubr.f32.gmra.mrb[44].mxu0 %v1573_v21 }
 0x20c   :  { %v1575_v24 = vpop.eup %1574 }
 0x20d   :  { %v1577_v25 = vpop.eup %1576  ;;  %1368 = vmatprep.mubr.f32.mxu0 %v1575_v24 }
 0x20e   :  { %1369 = vmatmul.mubr.f32.gmra.mrb[46].mxu0 %v1577_v25 }
 0x2a5   :  { %v1325_v26 = vpop.f32.mrb[16].mxu0 }
 0x2a6   :  { %v787_v27 = vadd.f32 %v1325_v26, %v1990_v55  ;;  %v781_v28 = vpop.f32.mrb[17].mxu0 }
 0x2a7   :  { %v782_v29 = vadd.f32 %v1990_v55, %v781_v28 }
 0x2a8   :  { %941 = vst [vmem:[#allocation2 + $0x8] sm:$0xff] %v787_v27 }
 0x2a9   :  { %940 = vst [vmem:[#allocation2] sm:$0xff] %v782_v29  ;;  %v1328_v30 = vpop.f32.mrb[18].mxu0 }
 0x2aa   :  { %v797_v31 = vadd.f32 %v1328_v30, %v1990_v55  ;;  %v791_v32 = vpop.f32.mrb[19].mxu0 }
 0x2ab   :  { %v792_v33 = vadd.f32 %v1990_v55, %v791_v32 }
 0x2ac   :  { %943 = vst [vmem:[#allocation2 + $0x18] sm:$0xff] %v797_v31 }
 0x2ad   :  { %942 = vst [vmem:[#allocation2 + $0x10] sm:$0xff] %v792_v33  ;;  %v1331_v34 = vpop.f32.mrb[20].mxu0 }
 0x2ae   :  { %v807_v35 = vadd.f32 %v1331_v34, %v1990_v55  ;;  %v801_v36 = vpop.f32.mrb[21].mxu0 }
 0x2af   :  { %v802_v37 = vadd.f32 %v1990_v55, %v801_v36 }
 0x2b0   :  { %945 = vst [vmem:[#allocation2 + $0x28] sm:$0xff] %v807_v35 }
 0x2b1   :  { %944 = vst [vmem:[#allocation2 + $0x20] sm:$0xff] %v802_v37  ;;  %v1334_v38 = vpop.f32.mrb[22].mxu0 }
 0x2b2   :  { %v817_v39 = vadd.f32 %v1334_v38, %v1990_v55  ;;  %v811_v40 = vpop.f32.mrb[23].mxu0 }
 0x2b3   :  { %v812_v41 = vadd.f32 %v1990_v55, %v811_v40 }
 0x2b4   :  { %947 = vst [vmem:[#allocation2 + $0x38] sm:$0xff] %v817_v39 }
 0x2b5   :  { %946 = vst [vmem:[#allocation2 + $0x30] sm:$0xff] %v812_v41  ;;  %v1337_v42 = vpop.f32.mrb[24].mxu0 }
 0x2b6   :  { %v827_v43 = vadd.f32 %v1337_v42, %v1990_v55  ;;  %v821_v44 = vpop.f32.mrb[25].mxu0 }
 0x2b7   :  { %v822_v45 = vadd.f32 %v1990_v55, %v821_v44 }
 0x2b8   :  { %949 = vst [vmem:[#allocation2 + $0x48] sm:$0xff] %v827_v43 }
 0x2b9   :  { %948 = vst [vmem:[#allocation2 + $0x40] sm:$0xff] %v822_v45  ;;  %v1340_v46 = vpop.f32.mrb[26].mxu0 }
 0x2ba   :  { %v837_v13 = vadd.f32 %v1340_v46, %v1990_v55  ;;  %v831_v47 = vpop.f32.mrb[27].mxu0 }
 0x2bb   :  { %v832_v48 = vadd.f32 %v1990_v55, %v831_v47 }
 0x2bc   :  { %951 = vst [vmem:[#allocation2 + $0x58] sm:$0xff] %v837_v13 }
 0x2bd   :  { %950 = vst [vmem:[#allocation2 + $0x50] sm:$0xff] %v832_v48  ;;  %v1343_v49 = vpop.f32.mrb[28].mxu0 }
 0x2be   :  { %v847_v50 = vadd.f32 %v1343_v49, %v1990_v55  ;;  %v841_v51 = vpop.f32.mrb[29].mxu0 }
 0x2bf   :  { %v842_v52 = vadd.f32 %v1990_v55, %v841_v51 }
 0x2c0   :  { %953 = vst [vmem:[#allocation2 + $0x68] sm:$0xff] %v847_v50 }
 0x2c1   :  { %952 = vst [vmem:[#allocation2 + $0x60] sm:$0xff] %v842_v52  ;;  %v1346_v53 = vpop.f32.mrb[30].mxu0 }
 0x2c2   :  { %v857_v54 = vadd.f32 %v1346_v53, %v1990_v55  ;;  %v851_v56 = vpop.f32.mrb[31].mxu0 }
 0x2c3   :  { %v852_v57 = vadd.f32 %v1990_v55, %v851_v56 }
 0x2c4   :  { %955 = vst [vmem:[#allocation2 + $0x78] sm:$0xff] %v857_v54 }
 0x2c5   :  { %954 = vst [vmem:[#allocation2 + $0x70] sm:$0xff] %v852_v57  ;;  %v1349_v58 = vpop.f32.mrb[32].mxu0 }
 0x2c6   :  { %v867_v59 = vadd.f32 %v1349_v58, %v1990_v55  ;;  %v861_v60 = vpop.f32.mrb[33].mxu0 }
 0x2c7   :  { %v862_v61 = vadd.f32 %v1990_v55, %v861_v60 }
 0x2c8   :  { %957 = vst [vmem:[#allocation2 + $0x88] sm:$0xff] %v867_v59 }
 0x2c9   :  { %956 = vst [vmem:[#allocation2 + $0x80] sm:$0xff] %v862_v61  ;;  %v1352_v62 = vpop.f32.mrb[34].mxu0 }
 0x2ca   :  { %v877_v63 = vadd.f32 %v1352_v62, %v1990_v55  ;;  %v871_v0 = vpop.f32.mrb[35].mxu0 }
 0x2cb   :  { %v872_v1 = vadd.f32 %v1990_v55, %v871_v0 }
 0x2cc   :  { %959 = vst [vmem:[#allocation2 + $0x98] sm:$0xff] %v877_v63 }
 0x2cd   :  { %958 = vst [vmem:[#allocation2 + $0x90] sm:$0xff] %v872_v1  ;;  %v1355_v2 = vpop.f32.mrb[36].mxu0 }
 0x2ce   :  { %v887_v3 = vadd.f32 %v1355_v2, %v1990_v55  ;;  %v881_v4 = vpop.f32.mrb[37].mxu0 }
 0x2cf   :  { %v882_v5 = vadd.f32 %v1990_v55, %v881_v4 }
 0x2d0   :  { %961 = vst [vmem:[#allocation2 + $0xa8] sm:$0xff] %v887_v3 }
 0x2d1   :  { %960 = vst [vmem:[#allocation2 + $0xa0] sm:$0xff] %v882_v5  ;;  %v1358_v6 = vpop.f32.mrb[38].mxu0 }
 0x2d2   :  { %v897_v7 = vadd.f32 %v1358_v6, %v1990_v55  ;;  %v891_v8 = vpop.f32.mrb[39].mxu0 }
 0x2d3   :  { %v892_v9 = vadd.f32 %v1990_v55, %v891_v8 }
 0x2d4   :  { %963 = vst [vmem:[#allocation2 + $0xb8] sm:$0xff] %v897_v7 }
 0x2d5   :  { %962 = vst [vmem:[#allocation2 + $0xb0] sm:$0xff] %v892_v9  ;;  %v1361_v10 = vpop.f32.mrb[40].mxu0 }
 0x2d6   :  { %v907_v11 = vadd.f32 %v1361_v10, %v1990_v55  ;;  %v901_v12 = vpop.f32.mrb[41].mxu0 }
 0x2d7   :  { %v902_v14 = vadd.f32 %v1990_v55, %v901_v12 }
 0x2d8   :  { %965 = vst [vmem:[#allocation2 + $0xc8] sm:$0xff] %v907_v11 }
 0x2d9   :  { %964 = vst [vmem:[#allocation2 + $0xc0] sm:$0xff] %v902_v14  ;;  %v1364_v16 = vpop.f32.mrb[42].mxu0 }
 0x2da   :  { %v917_v17 = vadd.f32 %v1364_v16, %v1990_v55  ;;  %v911_v18 = vpop.f32.mrb[43].mxu0 }
 0x2db   :  { %v912_v15 = vadd.f32 %v1990_v55, %v911_v18 }
 0x2dc   :  { %967 = vst [vmem:[#allocation2 + $0xd8] sm:$0xff] %v917_v17 }
 0x2dd   :  { %966 = vst [vmem:[#allocation2 + $0xd0] sm:$0xff] %v912_v15  ;;  %v1367_v19 = vpop.f32.mrb[44].mxu0 }
 0x2de   :  { %v927_v20 = vadd.f32 %v1367_v19, %v1990_v55  ;;  %v921_v22 = vpop.f32.mrb[45].mxu0 }
 0x2df   :  { %v922_v23 = vadd.f32 %v1990_v55, %v921_v22 }
 0x2e0   :  { %969 = vst [vmem:[#allocation2 + $0xe8] sm:$0xff] %v927_v20 }
 0x2e1   :  { %968 = vst [vmem:[#allocation2 + $0xe0] sm:$0xff] %v922_v23  ;;  %v1370_v21 = vpop.f32.mrb[46].mxu0 }
 0x2e2   :  { %v937_v24 = vadd.f32 %v1370_v21, %v1990_v55  ;;  %v931_v25 = vpop.f32.mrb[47].mxu0 }
 0x2e3   :  { %v932_v26 = vadd.f32 %v1990_v55, %v931_v25 }
 0x2e4   :  { %971 = vst [vmem:[#allocation2 + $0xf8] sm:$0xff] %v937_v24 }
 0x2e5   :  { %970 = vst [vmem:[#allocation2 + $0xf0] sm:$0xff] %v932_v26 }
 0x2e6   :  { %1589 = shalt.err (!%p1586_p4)
}
 0x2e7   :  { %s1590_s29 = scalar_lea.hbm %s2041_s5, 4096 }
 0x2e8   :  { %p1591_p5 = scmp.ne.s32.totalorder %s2041_s5, %s1590_s29  ;;  %p1594_p6 = scmp.lt.u32.totalorder %s1590_s29, %s2041_s5 }
 0x2ea   :  { %p1596_p7 = pnand %p1594_p6, %p1591_p5 }
 0x2ec   :  { %1599 = shalt.err (!%p1596_p7)
}
 0x2ed   :  { %s1603_s8 = smov 128   ;;  %s1604_s9 = smov 8  }
 0x2ee   :  { %983 = dma.vmem_to_hbm [thread:$0]  %s978_s25, 4096, %s2041_s5, [#allocation3], %s1603_s8, %s1603_s8, %s1604_s9  }
 0x2ef   :  { %1600 = dma.done.wait [#allocation3], 4096  }
 0x2f0   :  { %1601 = vsyncadd [#allocation3], 4294963200 }
 0x2f1   :  { %987 = vsyncpa [#allocation3], 1 }

</bundles_post_ra>
